<compile_context>
chip_gen: v5e
topology: v5e:2x2
jax: 0.10.0
libtpu: 0.0.40
codegen_flags: <defaults>
</compile_context>

<pallas_src>
import functools

import jax
import jax.numpy as jnp
from jax.experimental import pallas as pl
from jax.experimental.pallas import tpu as pltpu

EPS = 1e-12

_VMEM_SPEC = pl.BlockSpec(memory_space=pltpu.MemorySpace.VMEM)


def _round_up(v, m):
    return -(-int(v) // m) * m


# ----------------------------------------------------------------------------
# VMEM budget helper: generation-aware limit (75% of physical VMEM), sized from
# the real (single-buffered, whole-array) buffers plus relayout headroom.
# ----------------------------------------------------------------------------
def _padded_vmem_bytes(shape, itemsize):
    if len(shape) == 0:
        return itemsize
    if len(shape) == 1:
        return _round_up(shape[0], 128) * itemsize
    lead = 1
    for d in shape[:-2]:
        lead *= int(d)
    return lead * _round_up(shape[-2], 8) * _round_up(shape[-1], 128) * itemsize


def _vmem_capacity_bytes():
    try:
        return int(pltpu.get_tpu_info().vmem_capacity_bytes)
    except Exception:
        return 128 << 20


def _compiler_params(arrays, out_shapes):
    if not isinstance(out_shapes, (tuple, list)):
        out_shapes = (out_shapes,)
    total = 0
    for a in arrays:
        total += _padded_vmem_bytes(a.shape, a.dtype.itemsize)
    for o in out_shapes:
        total += _padded_vmem_bytes(o.shape, jnp.dtype(o.dtype).itemsize)
    cap = _vmem_capacity_bytes()
    # Single-buffered whole-array residency (no grid): no 2x multiplier;
    # 1.5x + 16 MiB slack covers compiler-internal temporaries.
    limit = int(1.5 * total) + (16 << 20)
    limit = max(32 << 20, min(limit, int(0.75 * cap)))
    return pltpu.CompilerParams(vmem_limit_bytes=int(limit))


# ----------------------------------------------------------------------------
# Shared in-kernel helpers (traced inline).  x is a (C, M) slab.
# ----------------------------------------------------------------------------
def _bn(x, gamma, beta, eps):
    """Two-pass per-channel batch norm over the lane (pixel) axis."""
    inv_m = 1.0 / x.shape[1]
    mean = jnp.sum(x, axis=1, keepdims=True) * inv_m
    d = x - mean
    var = jnp.sum(d * d, axis=1, keepdims=True) * inv_m
    return d * jax.lax.rsqrt(var + eps) * gamma + beta


def _bn_relu(x, gamma, beta, eps):
    return jnp.maximum(_bn(x, gamma, beta, eps), 0.0)


def _conv2x2_from_partials(p, keep_w, keep_h, w_cols, cout, cp):
    """Combine 4 per-tap partial products into the 2x2 'same' (bottom/right
    zero pad) conv output.

    p: (4*cp, M) = [tap(0,0); tap(0,1); tap(1,0); tap(1,1)] blocks, each block
    already contracted over cin (channel contraction commutes with the lane
    shift).  Shifts are XLU lane rolls; pad masks zero the shifted-in garbage
    at row/image boundaries.
    """
    p0 = p[0 * cp:0 * cp + cout]
    p1 = p[1 * cp:1 * cp + cout]
    p2 = p[2 * cp:2 * cp + cout]
    p3 = p[3 * cp:3 * cp + cout]
    out = p0
    out = out + jnp.roll(p1, -1, axis=1) * keep_w
    out = out + jnp.roll(p2, -w_cols, axis=1) * keep_h
    out = out + jnp.roll(p3, -(w_cols + 1), axis=1) * (keep_w * keep_h)
    return out


def _write_split(full, out_refs, split):
    if split is None:
        out_refs[0][...] = full
    else:
        out_refs[0][...] = full[:split]       # next stage conv input
        out_refs[1][...] = full[split:]       # next stage residual carry


# ----------------------------------------------------------------------------
# Kernel 1: BatchNorm2d + ConvTranspose2d(kernel=stride=(2,2)) as one matmul.
#   x: (C, M_in) with M_in = N*H*W;  w_up: (4C, C) rows ordered (kh, kw, cout).
#   out: (4C, M_in); depth-to-space + crop applied by the caller (TODO: fuse).
# ----------------------------------------------------------------------------
def _bn_deconv_kernel(x_ref, g_ref, b_ref, w_ref, bias_ref, o_ref, *, eps):
    xh = _bn(x_ref[...], g_ref[...], b_ref[...], eps)
    o_ref[...] = (jnp.dot(w_ref[...], xh, preferred_element_type=jnp.float32)
                  + bias_ref[...])


def upsample_bn_deconv(x2, gamma, beta, w_up, b_up, *, eps=EPS):
    c, m = x2.shape
    c4 = w_up.shape[0]
    args = (x2, gamma.reshape(c, 1), beta.reshape(c, 1), w_up,
            b_up.reshape(c4, 1))
    out_shape = jax.ShapeDtypeStruct((c4, m), jnp.float32)
    return pl.pallas_call(
        functools.partial(_bn_deconv_kernel, eps=eps),
        out_shape=out_shape,
        in_specs=[_VMEM_SPEC] * len(args),
        out_specs=_VMEM_SPEC,
        compiler_params=_compiler_params(args, out_shape),
    )(*args)


# ----------------------------------------------------------------------------
# Kernel 2a: first DenseBlock stage.  [upsampled, skip] concat never
# materializes: BN/ReLU and the conv contraction split exactly along the
# channel boundary (two matmuls, one tap-combine).
# ----------------------------------------------------------------------------
def _dense_first_kernel(z_ref, s_ref, gz_ref, bz_ref, gs_ref, bs_ref,
                        wz_ref, ws_ref, bias_ref, kw_ref, kh_ref, *out_refs,
                        w_cols, cout, cp, split, eps):
    az = _bn_relu(z_ref[...], gz_ref[...], bz_ref[...], eps)
    ask = _bn_relu(s_ref[...], gs_ref[...], bs_ref[...], eps)
    p = (jnp.dot(wz_ref[...], az, preferred_element_type=jnp.float32)
         + jnp.dot(ws_ref[...], ask, preferred_element_type=jnp.float32))
    conv = _conv2x2_from_partials(p, kw_ref[...], kh_ref[...], w_cols, cout, cp)
    _write_split(conv + bias_ref[...], out_refs, split)


# ----------------------------------------------------------------------------
# Kernel 2b: DenseBlock stage idx > 0.  Conv input and residual arrive as two
# separate, sublane-aligned refs; residual is loaded only at the final add.
# ----------------------------------------------------------------------------
def _dense_rest_kernel(x_ref, res_ref, g_ref, b_ref, w_ref, bias_ref,
                       kw_ref, kh_ref, *out_refs,
                       w_cols, cout, cp, split, eps):
    a = _bn_relu(x_ref[...], g_ref[...], b_ref[...], eps)
    p = jnp.dot(w_ref[...], a, preferred_element_type=jnp.float32)
    conv = _conv2x2_from_partials(p, kw_ref[...], kh_ref[...], w_cols, cout, cp)
    full = conv + bias_ref[...] + res_ref[...]          # residual loaded late
    _write_split(full, out_refs, split)


# ----------------------------------------------------------------------------
# Host-side wrappers.
# ----------------------------------------------------------------------------
def _stack_conv_weight(w, cp):
    """(2, 2, cin, cout) -> (4*cp, cin); rows [t*cp : t*cp+cout] = w[kh,kw].T
    with t = kh*2 + kw; per-tap blocks zero-padded to cp (multiple of 8)."""
    cin, cout = w.shape[2], w.shape[3]
    wt = jnp.transpose(w, (0, 1, 3, 2)).reshape(4, cout, cin)
    if cp != cout:
        wt = jnp.pad(wt, ((0, 0), (0, cp - cout), (0, 0)))
    return wt.reshape(4 * cp, cin)


def _dense_out(cout, m, split):
    if split is None:
        return jax.ShapeDtypeStruct((cout, m), jnp.float32), _VMEM_SPEC
    return ((jax.ShapeDtypeStruct((split, m), jnp.float32),
             jax.ShapeDtypeStruct((cout - split, m), jnp.float32)),
            (_VMEM_SPEC, _VMEM_SPEC))


def dense_block_first(z2, skip2, gamma, beta, w, bias, keep_w, keep_h,
                      w_cols, split, *, eps=EPS):
    c, m = z2.shape
    cs = skip2.shape[0]
    cout = w.shape[-1]
    cp = _round_up(cout, 8)
    wz = _stack_conv_weight(w[:, :, :c, :], cp)
    wsk = _stack_conv_weight(w[:, :, c:, :], cp)
    args = (z2, skip2,
            gamma[:c].reshape(c, 1), beta[:c].reshape(c, 1),
            gamma[c:].reshape(cs, 1), beta[c:].reshape(cs, 1),
            wz, wsk, bias.reshape(cout, 1), keep_w, keep_h)
    out_shape, out_specs = _dense_out(cout, m, split)
    return pl.pallas_call(
        functools.partial(_dense_first_kernel, w_cols=w_cols, cout=cout,
                          cp=cp, split=split, eps=eps),
        out_shape=out_shape,
        in_specs=[_VMEM_SPEC] * len(args),
        out_specs=out_specs,
        compiler_params=_compiler_params(args, out_shape),
    )(*args)


def dense_block_rest(x2, res2, gamma, beta, w, bias, keep_w, keep_h,
                     w_cols, split, *, eps=EPS):
    cin, m = x2.shape
    cout = w.shape[-1]
    cp = _round_up(cout, 8)
    w4 = _stack_conv_weight(w, cp)
    args = (x2, res2, gamma.reshape(cin, 1), beta.reshape(cin, 1),
            w4, bias.reshape(cout, 1), keep_w, keep_h)
    out_shape, out_specs = _dense_out(cout, m, split)
    return pl.pallas_call(
        functools.partial(_dense_rest_kernel, w_cols=w_cols, cout=cout,
                          cp=cp, split=split, eps=eps),
        out_shape=out_shape,
        in_specs=[_VMEM_SPEC] * len(args),
        out_specs=out_specs,
        compiler_params=_compiler_params(args, out_shape),
    )(*args)


# ----------------------------------------------------------------------------
# Full UpSampleDenseBlock forward.  NCHW in / NCHW out.
# ----------------------------------------------------------------------------
def upsample_dense_block_forward(params, x_nchw, skip_nchw, *, eps=EPS):
    x = x_nchw.astype(jnp.float32)
    skip = skip_nchw.astype(jnp.float32)
    n, c, h, w = x.shape
    _, cs, hs, ws = skip.shape

    # Channels on sublanes, pixels on lanes.
    x2 = jnp.transpose(x, (1, 0, 2, 3)).reshape(c, n * h * w)
    s2 = jnp.transpose(skip, (1, 0, 2, 3)).reshape(cs, n * hs * ws)

    # 1) BN + ConvTranspose2d(k=s=2) as one Pallas matmul -> (4C, N*H*W).
    wt = params["up_wt"]                                   # (Cin, Cout, 2, 2)
    w_up = jnp.transpose(wt, (2, 3, 1, 0)).reshape(4 * c, c)
    b_up = jnp.tile(params["up_b"], 4)
    y = upsample_bn_deconv(x2, params["bn0_gamma"], params["bn0_beta"],
                           w_up, b_up, eps=eps)

    # 2) depth-to-space + crop: single fused XLA copy.
    # TODO(synk): fuse this interleave into the deconv kernel once the
    #             (..., 2, W, 2) lane-interleave store lowers cleanly.
    u = (y.reshape(2, 2, c, n, h, w)
          .transpose(2, 3, 4, 0, 5, 1)
          .reshape(c, n, 2 * h, 2 * w))
    off_h = (2 * h - hs) // 2
    off_w = (2 * w - ws) // 2
    u = u[:, :, off_h:off_h + hs, off_w:off_w + ws]
    m = n * hs * ws
    z2 = u.reshape(c, m)

    # Bottom/right pad masks shared by every dense stage (1.0 keep / 0.0 pad).
    lane = jnp.arange(m, dtype=jnp.int32)
    keep_w = ((lane % ws) < ws - 1).astype(jnp.float32).reshape(1, m)
    keep_h = (((lane // ws) % hs) < hs - 1).astype(jnp.float32).reshape(1, m)

    # 3) DenseBlock: stage 0 fuses the [z, skip] concat; every stage emits
    #    (next conv input, next residual) as two aligned outputs.
    growth = params["growth_rate"]
    depth = len(growth)
    blk0 = params["blocks"][0]
    split0 = growth[0] if depth > 1 else None
    cur = dense_block_first(z2, s2, blk0["gamma"], blk0["beta"], blk0["w"],
                            blk0["b"], keep_w, keep_h, ws, split0, eps=eps)
    for idx in range(1, depth):
        blk = params["blocks"][idx]
        xin, res = cur
        split = growth[idx] if idx < depth - 1 else None
        cur = dense_block_rest(xin, res, blk["gamma"], blk["beta"], blk["w"],
                               blk["b"], keep_w, keep_h, ws, split, eps=eps)

    out = cur.reshape(growth[-1], n, hs, ws)
    return jnp.transpose(out, (1, 0, 2, 3))                # NCHW


# ----------------------------------------------------------------------------
# Pure-JAX reference (same semantics, plain XLA) for validation.
# ----------------------------------------------------------------------------
def _bn_train(x, gamma, beta, eps):
    mean = jnp.mean(x, axis=(0, 1, 2), keepdims=True)
    var = jnp.mean(jnp.square(x - mean), axis=(0, 1, 2), keepdims=True)
    return (x - mean) * jax.lax.rsqrt(var + eps) * gamma + beta


def reference_forward(params, x_nchw, skip_nchw, *, eps=EPS):
    x = jnp.transpose(x_nchw, (0, 2, 3, 1)).astype(jnp.float32)
    skip = jnp.transpose(skip_nchw, (0, 2, 3, 1)).astype(jnp.float32)
    N, H, W, C = x.shape
    xh = _bn_train(x, params["bn0_gamma"].reshape(1, 1, 1, -1),
                   params["bn0_beta"].reshape(1, 1, 1, -1), eps)
    wt, ub = params["up_wt"], params["up_b"]
    out = jnp.zeros((N, 2 * H, 2 * W, C), jnp.float32)
    for kh in range(2):
        for kw in range(2):
            y = jnp.einsum("nhwi,io->nhwo", xh, wt[:, :, kh, kw])
            out = out.at[:, kh::2, kw::2, :].set(y)
    out = out + ub.reshape(1, 1, 1, -1)
    Hs, Ws = skip.shape[1], skip.shape[2]
    pt, pw = (2 * H - Hs) // 2, (2 * W - Ws) // 2
    out = out[:, pt:pt + Hs, pw:pw + Ws, :]
    h = jnp.concatenate([out, skip], axis=-1)
    growth = params["growth_rate"]
    x_res = None
    for idx in range(len(growth)):
        if idx == 0:
            xin, res = h, 0.0
        else:
            c_prev = growth[idx - 1]
            xin, res = x_res[..., :c_prev], x_res[..., c_prev:]
        blk = params["blocks"][idx]
        Hc, Wc = xin.shape[1], xin.shape[2]
        a = jnp.maximum(_bn_train(xin, blk["gamma"].reshape(1, 1, 1, -1),
                                  blk["beta"].reshape(1, 1, 1, -1), eps), 0.0)
        ap = jnp.pad(a, ((0, 0), (0, 1), (0, 1), (0, 0)))
        conv = 0.0
        for kh in range(2):
            for kw in range(2):
                conv = conv + jnp.einsum("nhwi,io->nhwo",
                                         ap[:, kh:kh + Hc, kw:kw + Wc, :],
                                         blk["w"][kh, kw])
        x_res = conv + blk["b"].reshape(1, 1, 1, -1) + res
    return jnp.transpose(x_res, (0, 3, 1, 2))


# ----------------------------------------------------------------------------
# Deterministic parameter init (shapes follow the PyTorch module __init__).
# ----------------------------------------------------------------------------
def init_params(key, in_channels, skip_channels, growth_rate):
    ks = iter(jax.random.split(key, 64))
    p = {"growth_rate": list(growth_rate)}
    p["bn0_gamma"] = 1.0 + 0.1 * jax.random.normal(next(ks), (in_channels,), jnp.float32)
    p["bn0_beta"] = 0.1 * jax.random.normal(next(ks), (in_channels,), jnp.float32)
    # ConvTranspose2d weight: (in_channels, out_channels, kH, kW)
    p["up_wt"] = 0.3 * jax.random.normal(next(ks), (in_channels, in_channels, 2, 2), jnp.float32)
    p["up_b"] = 0.1 * jax.random.normal(next(ks), (in_channels,), jnp.float32)
    blocks = []
    for idx in range(len(growth_rate)):
        cin = (in_channels + skip_channels) if idx == 0 else growth_rate[idx - 1]
        cout = sum(growth_rate[idx:])
        blocks.append({
            "gamma": 1.0 + 0.1 * jax.random.normal(next(ks), (cin,), jnp.float32),
            "beta": 0.1 * jax.random.normal(next(ks), (cin,), jnp.float32),
            "w": 0.3 * jax.random.normal(next(ks), (2, 2, cin, cout), jnp.float32),
            "b": 0.1 * jax.random.normal(next(ks), (cout,), jnp.float32),
        })
    p["blocks"] = blocks
    return p


if __name__ == "__main__":
    key = jax.random.PRNGKey(0)
    kx, ksk, kp = jax.random.split(key, 3)

    N, in_channels, H, W = 2, 4, 8, 8
    skip_channels = 4
    growth_rate = [6, 5, 4]          # depth = 3, out_channels = 4

    x = jax.random.normal(kx, (N, in_channels, H, W), jnp.float32)        # NCHW
    skip = jax.random.normal(ksk, (N, skip_channels, 2 * H, 2 * W), jnp.float32)

    params = init_params(kp, in_channels, skip_channels, growth_rate)

    fwd = jax.jit(lambda a, b: upsample_dense_block_forward(params, a, b))
    out = jax.block_until_ready(fwd(x, skip))
    assert out.shape == (N, growth_rate[-1], 2 * H, 2 * W), out.shape

    ref = reference_forward(params, x, skip)
    err = float(jnp.max(jnp.abs(out - ref)))
    if err < 1e-3:
        print("KERNEL_OK")
    else:
        print("MISMATCH max_abs_err=", err)
</pallas_src>

<mosaic_0001>
module attributes {stable_mosaic.version = 11 : i64} {
  func.func @_bn_deconv_kernel(%arg0: memref<4x128xf32, #tpu.memory_space<vmem>>, %arg1: memref<4x1xf32, #tpu.memory_space<vmem>>, %arg2: memref<4x1xf32, #tpu.memory_space<vmem>>, %arg3: memref<16x4xf32, #tpu.memory_space<vmem>>, %arg4: memref<16x1xf32, #tpu.memory_space<vmem>>, %arg5: memref<16x128xf32, #tpu.memory_space<vmem>>) attributes {dimension_semantics = [], scalar_prefetch = 0 : i64, scratch_operands = 0 : i64, tpu.core_type = #tpu.core_type<tc>} {
    %c0 = arith.constant 0 : index
    %c0_0 = arith.constant 0 : index
    %0 = vector.load %arg0[%c0, %c0_0] : memref<4x128xf32, #tpu.memory_space<vmem>>, vector<4x128xf32>
    %c0_1 = arith.constant 0 : index
    %c0_2 = arith.constant 0 : index
    %1 = vector.load %arg1[%c0_1, %c0_2] : memref<4x1xf32, #tpu.memory_space<vmem>>, vector<4x1xf32>
    %c0_3 = arith.constant 0 : index
    %c0_4 = arith.constant 0 : index
    %2 = vector.load %arg2[%c0_3, %c0_4] : memref<4x1xf32, #tpu.memory_space<vmem>>, vector<4x1xf32>
    %cst = arith.constant dense<0.000000e+00> : vector<4xf32>
    %3 = vector.multi_reduction <add>, %0, %cst [1] : vector<4x128xf32> to vector<4xf32>
    %4 = vector.shape_cast %3 : vector<4xf32> to vector<4x1xf32>
    %cst_5 = arith.constant 7.812500e-03 : f32
    %5 = vector.broadcast %cst_5 : f32 to vector<4x1xf32>
    %6 = arith.mulf %4, %5 : vector<4x1xf32>
    %7 = vector.broadcast %6 : vector<4x1xf32> to vector<4x128xf32>
    %8 = arith.subf %0, %7 : vector<4x128xf32>
    %9 = arith.mulf %8, %8 : vector<4x128xf32>
    %cst_6 = arith.constant dense<0.000000e+00> : vector<4xf32>
    %10 = vector.multi_reduction <add>, %9, %cst_6 [1] : vector<4x128xf32> to vector<4xf32>
    %11 = vector.shape_cast %10 : vector<4xf32> to vector<4x1xf32>
    %cst_7 = arith.constant 7.812500e-03 : f32
    %12 = vector.broadcast %cst_7 : f32 to vector<4x1xf32>
    %13 = arith.mulf %11, %12 : vector<4x1xf32>
    %cst_8 = arith.constant 9.99999996E-13 : f32
    %14 = vector.broadcast %cst_8 : f32 to vector<4x1xf32>
    %15 = arith.addf %13, %14 : vector<4x1xf32>
    %16 = math.rsqrt %15 : vector<4x1xf32>
    %17 = vector.broadcast %16 : vector<4x1xf32> to vector<4x128xf32>
    %18 = arith.mulf %8, %17 : vector<4x128xf32>
    %19 = vector.broadcast %1 : vector<4x1xf32> to vector<4x128xf32>
    %20 = arith.mulf %18, %19 : vector<4x128xf32>
    %21 = vector.broadcast %2 : vector<4x1xf32> to vector<4x128xf32>
    %22 = arith.addf %20, %21 : vector<4x128xf32>
    %c0_9 = arith.constant 0 : index
    %c0_10 = arith.constant 0 : index
    %23 = vector.load %arg3[%c0_9, %c0_10] : memref<16x4xf32, #tpu.memory_space<vmem>>, vector<16x4xf32>
    %cst_11 = arith.constant dense<0.000000e+00> : vector<16x128xf32>
    %24 = tpu.matmul %23, %22, %cst_11 {dimension_numbers = #tpu.dot_dimension_numbers<[1], [0], [0], [1], [0, 0, 1, 1], [], []>} : vector<16x4xf32>, vector<4x128xf32>, vector<16x128xf32> -> vector<16x128xf32>
    %c0_12 = arith.constant 0 : index
    %c0_13 = arith.constant 0 : index
    %25 = vector.load %arg4[%c0_12, %c0_13] : memref<16x1xf32, #tpu.memory_space<vmem>>, vector<16x1xf32>
    %26 = vector.broadcast %25 : vector<16x1xf32> to vector<16x128xf32>
    %27 = arith.addf %24, %26 : vector<16x128xf32>
    %c0_14 = arith.constant 0 : index
    %c0_15 = arith.constant 0 : index
    %28 = vector.load %arg5[%c0_14, %c0_15] : memref<16x128xf32, #tpu.memory_space<vmem>>, vector<16x128xf32>
    tpu.vector_store %arg5[%c0_14, %c0_15], %27 {strides = array<i32>} : memref<16x128xf32, #tpu.memory_space<vmem>>, vector<16x128xf32>,
    return
  }
}

module attributes {stable_mosaic.version = 11 : i64} {
  func.func @_dense_first_kernel(%arg0: memref<4x512xf32, #tpu.memory_space<vmem>>, %arg1: memref<4x512xf32, #tpu.memory_space<vmem>>, %arg2: memref<4x1xf32, #tpu.memory_space<vmem>>, %arg3: memref<4x1xf32, #tpu.memory_space<vmem>>, %arg4: memref<4x1xf32, #tpu.memory_space<vmem>>, %arg5: memref<4x1xf32, #tpu.memory_space<vmem>>, %arg6: memref<64x4xf32, #tpu.memory_space<vmem>>, %arg7: memref<64x4xf32, #tpu.memory_space<vmem>>, %arg8: memref<15x1xf32, #tpu.memory_space<vmem>>, %arg9: memref<1x512xf32, #tpu.memory_space<vmem>>, %arg10: memref<1x512xf32, #tpu.memory_space<vmem>>, %arg11: memref<6x512xf32, #tpu.memory_space<vmem>>, %arg12: memref<9x512xf32, #tpu.memory_space<vmem>>) attributes {dimension_semantics = [], scalar_prefetch = 0 : i64, scratch_operands = 0 : i64, tpu.core_type = #tpu.core_type<tc>} {
    %c0 = arith.constant 0 : index
    %c0_0 = arith.constant 0 : index
    %0 = vector.load %arg0[%c0, %c0_0] : memref<4x512xf32, #tpu.memory_space<vmem>>, vector<4x512xf32>
    %c0_1 = arith.constant 0 : index
    %c0_2 = arith.constant 0 : index
    %1 = vector.load %arg2[%c0_1, %c0_2] : memref<4x1xf32, #tpu.memory_space<vmem>>, vector<4x1xf32>
    %c0_3 = arith.constant 0 : index
    %c0_4 = arith.constant 0 : index
    %2 = vector.load %arg3[%c0_3, %c0_4] : memref<4x1xf32, #tpu.memory_space<vmem>>, vector<4x1xf32>
    %cst = arith.constant dense<0.000000e+00> : vector<4xf32>
    %3 = vector.multi_reduction <add>, %0, %cst [1] : vector<4x512xf32> to vector<4xf32>
    %4 = vector.shape_cast %3 : vector<4xf32> to vector<4x1xf32>
    %cst_5 = arith.constant 0.001953125 : f32
    %5 = vector.broadcast %cst_5 : f32 to vector<4x1xf32>
    %6 = arith.mulf %4, %5 : vector<4x1xf32>
    %7 = vector.broadcast %6 : vector<4x1xf32> to vector<4x512xf32>
    %8 = arith.subf %0, %7 : vector<4x512xf32>
    %9 = arith.mulf %8, %8 : vector<4x512xf32>
    %cst_6 = arith.constant dense<0.000000e+00> : vector<4xf32>
    %10 = vector.multi_reduction <add>, %9, %cst_6 [1] : vector<4x512xf32> to vector<4xf32>
    %11 = vector.shape_cast %10 : vector<4xf32> to vector<4x1xf32>
    %cst_7 = arith.constant 0.001953125 : f32
    %12 = vector.broadcast %cst_7 : f32 to vector<4x1xf32>
    %13 = arith.mulf %11, %12 : vector<4x1xf32>
    %cst_8 = arith.constant 9.99999996E-13 : f32
    %14 = vector.broadcast %cst_8 : f32 to vector<4x1xf32>
    %15 = arith.addf %13, %14 : vector<4x1xf32>
    %16 = math.rsqrt %15 : vector<4x1xf32>
    %17 = vector.broadcast %16 : vector<4x1xf32> to vector<4x512xf32>
    %18 = arith.mulf %8, %17 : vector<4x512xf32>
    %19 = vector.broadcast %1 : vector<4x1xf32> to vector<4x512xf32>
    %20 = arith.mulf %18, %19 : vector<4x512xf32>
    %21 = vector.broadcast %2 : vector<4x1xf32> to vector<4x512xf32>
    %22 = arith.addf %20, %21 : vector<4x512xf32>
    %cst_9 = arith.constant 0.000000e+00 : f32
    %23 = vector.broadcast %cst_9 : f32 to vector<4x512xf32>
    %24 = arith.maximumf %22, %23 : vector<4x512xf32>
    %c0_10 = arith.constant 0 : index
    %c0_11 = arith.constant 0 : index
    %25 = vector.load %arg1[%c0_10, %c0_11] : memref<4x512xf32, #tpu.memory_space<vmem>>, vector<4x512xf32>
    %c0_12 = arith.constant 0 : index
    %c0_13 = arith.constant 0 : index
    %26 = vector.load %arg4[%c0_12, %c0_13] : memref<4x1xf32, #tpu.memory_space<vmem>>, vector<4x1xf32>
    %c0_14 = arith.constant 0 : index
    %c0_15 = arith.constant 0 : index
    %27 = vector.load %arg5[%c0_14, %c0_15] : memref<4x1xf32, #tpu.memory_space<vmem>>, vector<4x1xf32>
    %cst_16 = arith.constant dense<0.000000e+00> : vector<4xf32>
    %28 = vector.multi_reduction <add>, %25, %cst_16 [1] : vector<4x512xf32> to vector<4xf32>
    %29 = vector.shape_cast %28 : vector<4xf32> to vector<4x1xf32>
    %cst_17 = arith.constant 0.001953125 : f32
    %30 = vector.broadcast %cst_17 : f32 to vector<4x1xf32>
    %31 = arith.mulf %29, %30 : vector<4x1xf32>
    %32 = vector.broadcast %31 : vector<4x1xf32> to vector<4x512xf32>
    %33 = arith.subf %25, %32 : vector<4x512xf32>
    %34 = arith.mulf %33, %33 : vector<4x512xf32>
    %cst_18 = arith.constant dense<0.000000e+00> : vector<4xf32>
    %35 = vector.multi_reduction <add>, %34, %cst_18 [1] : vector<4x512xf32> to vector<4xf32>
    %36 = vector.shape_cast %35 : vector<4xf32> to vector<4x1xf32>
    %cst_19 = arith.constant 0.001953125 : f32
    %37 = vector.broadcast %cst_19 : f32 to vector<4x1xf32>
    %38 = arith.mulf %36, %37 : vector<4x1xf32>
    %cst_20 = arith.constant 9.99999996E-13 : f32
    %39 = vector.broadcast %cst_20 : f32 to vector<4x1xf32>
    %40 = arith.addf %38, %39 : vector<4x1xf32>
    %41 = math.rsqrt %40 : vector<4x1xf32>
    %42 = vector.broadcast %41 : vector<4x1xf32> to vector<4x512xf32>
    %43 = arith.mulf %33, %42 : vector<4x512xf32>
    %44 = vector.broadcast %26 : vector<4x1xf32> to vector<4x512xf32>
    %45 = arith.mulf %43, %44 : vector<4x512xf32>
    %46 = vector.broadcast %27 : vector<4x1xf32> to vector<4x512xf32>
    %47 = arith.addf %45, %46 : vector<4x512xf32>
    %cst_21 = arith.constant 0.000000e+00 : f32
    %48 = vector.broadcast %cst_21 : f32 to vector<4x512xf32>
    %49 = arith.maximumf %47, %48 : vector<4x512xf32>
    %c0_22 = arith.constant 0 : index
    %c0_23 = arith.constant 0 : index
    %50 = vector.load %arg6[%c0_22, %c0_23] : memref<64x4xf32, #tpu.memory_space<vmem>>, vector<64x4xf32>
    %cst_24 = arith.constant dense<0.000000e+00> : vector<64x512xf32>
    %51 = tpu.matmul %50, %24, %cst_24 {dimension_numbers = #tpu.dot_dimension_numbers<[1], [0], [0], [1], [0, 0, 1, 1], [], []>} : vector<64x4xf32>, vector<4x512xf32>, vector<64x512xf32> -> vector<64x512xf32>
    %c0_25 = arith.constant 0 : index
    %c0_26 = arith.constant 0 : index
    %52 = vector.load %arg7[%c0_25, %c0_26] : memref<64x4xf32, #tpu.memory_space<vmem>>, vector<64x4xf32>
    %cst_27 = arith.constant dense<0.000000e+00> : vector<64x512xf32>
    %53 = tpu.matmul %52, %49, %cst_27 {dimension_numbers = #tpu.dot_dimension_numbers<[1], [0], [0], [1], [0, 0, 1, 1], [], []>} : vector<64x4xf32>, vector<4x512xf32>, vector<64x512xf32> -> vector<64x512xf32>
    %54 = arith.addf %51, %53 : vector<64x512xf32>
    %c0_28 = arith.constant 0 : index
    %c0_29 = arith.constant 0 : index
    %55 = vector.load %arg9[%c0_28, %c0_29] : memref<1x512xf32, #tpu.memory_space<vmem>>, vector<1x512xf32>
    %c0_30 = arith.constant 0 : index
    %c0_31 = arith.constant 0 : index
    %56 = vector.load %arg10[%c0_30, %c0_31] : memref<1x512xf32, #tpu.memory_space<vmem>>, vector<1x512xf32>
    %57 = vector.extract_strided_slice %54 {offsets = [0, 0], sizes = [15, 512], strides = [1, 1]} : vector<64x512xf32> to vector<15x512xf32>
    %58 = vector.extract_strided_slice %54 {offsets = [16, 0], sizes = [15, 512], strides = [1, 1]} : vector<64x512xf32> to vector<15x512xf32>
    %59 = vector.extract_strided_slice %54 {offsets = [32, 0], sizes = [15, 512], strides = [1, 1]} : vector<64x512xf32> to vector<15x512xf32>
    %60 = vector.extract_strided_slice %54 {offsets = [48, 0], sizes = [15, 512], strides = [1, 1]} : vector<64x512xf32> to vector<15x512xf32>
    %61 = vector.extract_strided_slice %58 {offsets = [0, 1], sizes = [15, 511], strides = [1, 1]} : vector<15x512xf32> to vector<15x511xf32>
    %62 = vector.extract_strided_slice %58 {offsets = [0, 0], sizes = [15, 1], strides = [1, 1]} : vector<15x512xf32> to vector<15x1xf32>
    %63 = tpu.concatenate %61, %62 in 1 : vector<15x511xf32>, vector<15x1xf32> -> vector<15x512xf32>
    %64 = vector.broadcast %55 : vector<1x512xf32> to vector<15x512xf32>
    %65 = arith.mulf %63, %64 : vector<15x512xf32>
    %66 = arith.addf %57, %65 : vector<15x512xf32>
    %67 = vector.extract_strided_slice %59 {offsets = [0, 16], sizes = [15, 496], strides = [1, 1]} : vector<15x512xf32> to vector<15x496xf32>
    %68 = vector.extract_strided_slice %59 {offsets = [0, 0], sizes = [15, 16], strides = [1, 1]} : vector<15x512xf32> to vector<15x16xf32>
    %69 = tpu.concatenate %67, %68 in 1 : vector<15x496xf32>, vector<15x16xf32> -> vector<15x512xf32>
    %70 = vector.broadcast %56 : vector<1x512xf32> to vector<15x512xf32>
    %71 = arith.mulf %69, %70 : vector<15x512xf32>
    %72 = arith.addf %66, %71 : vector<15x512xf32>
    %73 = vector.extract_strided_slice %60 {offsets = [0, 17], sizes = [15, 495], strides = [1, 1]} : vector<15x512xf32> to vector<15x495xf32>
    %74 = vector.extract_strided_slice %60 {offsets = [0, 0], sizes = [15, 17], strides = [1, 1]} : vector<15x512xf32> to vector<15x17xf32>
    %75 = tpu.concatenate %73, %74 in 1 : vector<15x495xf32>, vector<15x17xf32> -> vector<15x512xf32>
    %76 = arith.mulf %55, %56 : vector<1x512xf32>
    %77 = vector.broadcast %76 : vector<1x512xf32> to vector<15x512xf32>
    %78 = arith.mulf %75, %77 : vector<15x512xf32>
    %79 = arith.addf %72, %78 : vector<15x512xf32>
    %c0_32 = arith.constant 0 : index
    %c0_33 = arith.constant 0 : index
    %80 = vector.load %arg8[%c0_32, %c0_33] : memref<15x1xf32, #tpu.memory_space<vmem>>, vector<15x1xf32>
    %81 = vector.broadcast %80 : vector<15x1xf32> to vector<15x512xf32>
    %82 = arith.addf %79, %81 : vector<15x512xf32>
    %83 = vector.extract_strided_slice %82 {offsets = [0, 0], sizes = [6, 512], strides = [1, 1]} : vector<15x512xf32> to vector<6x512xf32>
    %c0_34 = arith.constant 0 : index
    %c0_35 = arith.constant 0 : index
    %84 = vector.load %arg11[%c0_34, %c0_35] : memref<6x512xf32, #tpu.memory_space<vmem>>, vector<6x512xf32>
    tpu.vector_store %arg11[%c0_34, %c0_35], %83 {strides = array<i32>} : memref<6x512xf32, #tpu.memory_space<vmem>>, vector<6x512xf32>,
    %85 = vector.extract_strided_slice %82 {offsets = [6, 0], sizes = [9, 512], strides = [1, 1]} : vector<15x512xf32> to vector<9x512xf32>
    %c0_36 = arith.constant 0 : index
    %c0_37 = arith.constant 0 : index
    %86 = vector.load %arg12[%c0_36, %c0_37] : memref<9x512xf32, #tpu.memory_space<vmem>>, vector<9x512xf32>
    tpu.vector_store %arg12[%c0_36, %c0_37], %85 {strides = array<i32>} : memref<9x512xf32, #tpu.memory_space<vmem>>, vector<9x512xf32>,
    return
  }
}

module attributes {stable_mosaic.version = 11 : i64} {
  func.func @_dense_rest_kernel(%arg0: memref<6x512xf32, #tpu.memory_space<vmem>>, %arg1: memref<9x512xf32, #tpu.memory_space<vmem>>, %arg2: memref<6x1xf32, #tpu.memory_space<vmem>>, %arg3: memref<6x1xf32, #tpu.memory_space<vmem>>, %arg4: memref<64x6xf32, #tpu.memory_space<vmem>>, %arg5: memref<9x1xf32, #tpu.memory_space<vmem>>, %arg6: memref<1x512xf32, #tpu.memory_space<vmem>>, %arg7: memref<1x512xf32, #tpu.memory_space<vmem>>, %arg8: memref<5x512xf32, #tpu.memory_space<vmem>>, %arg9: memref<4x512xf32, #tpu.memory_space<vmem>>) attributes {dimension_semantics = [], scalar_prefetch = 0 : i64, scratch_operands = 0 : i64, tpu.core_type = #tpu.core_type<tc>} {
    %c0 = arith.constant 0 : index
    %c0_0 = arith.constant 0 : index
    %0 = vector.load %arg0[%c0, %c0_0] : memref<6x512xf32, #tpu.memory_space<vmem>>, vector<6x512xf32>
    %c0_1 = arith.constant 0 : index
    %c0_2 = arith.constant 0 : index
    %1 = vector.load %arg2[%c0_1, %c0_2] : memref<6x1xf32, #tpu.memory_space<vmem>>, vector<6x1xf32>
    %c0_3 = arith.constant 0 : index
    %c0_4 = arith.constant 0 : index
    %2 = vector.load %arg3[%c0_3, %c0_4] : memref<6x1xf32, #tpu.memory_space<vmem>>, vector<6x1xf32>
    %cst = arith.constant dense<0.000000e+00> : vector<6xf32>
    %3 = vector.multi_reduction <add>, %0, %cst [1] : vector<6x512xf32> to vector<6xf32>
    %4 = vector.shape_cast %3 : vector<6xf32> to vector<6x1xf32>
    %cst_5 = arith.constant 0.001953125 : f32
    %5 = vector.broadcast %cst_5 : f32 to vector<6x1xf32>
    %6 = arith.mulf %4, %5 : vector<6x1xf32>
    %7 = vector.broadcast %6 : vector<6x1xf32> to vector<6x512xf32>
    %8 = arith.subf %0, %7 : vector<6x512xf32>
    %9 = arith.mulf %8, %8 : vector<6x512xf32>
    %cst_6 = arith.constant dense<0.000000e+00> : vector<6xf32>
    %10 = vector.multi_reduction <add>, %9, %cst_6 [1] : vector<6x512xf32> to vector<6xf32>
    %11 = vector.shape_cast %10 : vector<6xf32> to vector<6x1xf32>
    %cst_7 = arith.constant 0.001953125 : f32
    %12 = vector.broadcast %cst_7 : f32 to vector<6x1xf32>
    %13 = arith.mulf %11, %12 : vector<6x1xf32>
    %cst_8 = arith.constant 9.99999996E-13 : f32
    %14 = vector.broadcast %cst_8 : f32 to vector<6x1xf32>
    %15 = arith.addf %13, %14 : vector<6x1xf32>
    %16 = math.rsqrt %15 : vector<6x1xf32>
    %17 = vector.broadcast %16 : vector<6x1xf32> to vector<6x512xf32>
    %18 = arith.mulf %8, %17 : vector<6x512xf32>
    %19 = vector.broadcast %1 : vector<6x1xf32> to vector<6x512xf32>
    %20 = arith.mulf %18, %19 : vector<6x512xf32>
    %21 = vector.broadcast %2 : vector<6x1xf32> to vector<6x512xf32>
    %22 = arith.addf %20, %21 : vector<6x512xf32>
    %cst_9 = arith.constant 0.000000e+00 : f32
    %23 = vector.broadcast %cst_9 : f32 to vector<6x512xf32>
    %24 = arith.maximumf %22, %23 : vector<6x512xf32>
    %c0_10 = arith.constant 0 : index
    %c0_11 = arith.constant 0 : index
    %25 = vector.load %arg4[%c0_10, %c0_11] : memref<64x6xf32, #tpu.memory_space<vmem>>, vector<64x6xf32>
    %cst_12 = arith.constant dense<0.000000e+00> : vector<64x512xf32>
    %26 = tpu.matmul %25, %24, %cst_12 {dimension_numbers = #tpu.dot_dimension_numbers<[1], [0], [0], [1], [0, 0, 1, 1], [], []>} : vector<64x6xf32>, vector<6x512xf32>, vector<64x512xf32> -> vector<64x512xf32>
    %c0_13 = arith.constant 0 : index
    %c0_14 = arith.constant 0 : index
    %27 = vector.load %arg6[%c0_13, %c0_14] : memref<1x512xf32, #tpu.memory_space<vmem>>, vector<1x512xf32>
    %c0_15 = arith.constant 0 : index
    %c0_16 = arith.constant 0 : index
    %28 = vector.load %arg7[%c0_15, %c0_16] : memref<1x512xf32, #tpu.memory_space<vmem>>, vector<1x512xf32>
    %29 = vector.extract_strided_slice %26 {offsets = [0, 0], sizes = [9, 512], strides = [1, 1]} : vector<64x512xf32> to vector<9x512xf32>
    %30 = vector.extract_strided_slice %26 {offsets = [16, 0], sizes = [9, 512], strides = [1, 1]} : vector<64x512xf32> to vector<9x512xf32>
    %31 = vector.extract_strided_slice %26 {offsets = [32, 0], sizes = [9, 512], strides = [1, 1]} : vector<64x512xf32> to vector<9x512xf32>
    %32 = vector.extract_strided_slice %26 {offsets = [48, 0], sizes = [9, 512], strides = [1, 1]} : vector<64x512xf32> to vector<9x512xf32>
    %33 = vector.extract_strided_slice %30 {offsets = [0, 1], sizes = [9, 511], strides = [1, 1]} : vector<9x512xf32> to vector<9x511xf32>
    %34 = vector.extract_strided_slice %30 {offsets = [0, 0], sizes = [9, 1], strides = [1, 1]} : vector<9x512xf32> to vector<9x1xf32>
    %35 = tpu.concatenate %33, %34 in 1 : vector<9x511xf32>, vector<9x1xf32> -> vector<9x512xf32>
    %36 = vector.broadcast %27 : vector<1x512xf32> to vector<9x512xf32>
    %37 = arith.mulf %35, %36 : vector<9x512xf32>
    %38 = arith.addf %29, %37 : vector<9x512xf32>
    %39 = vector.extract_strided_slice %31 {offsets = [0, 16], sizes = [9, 496], strides = [1, 1]} : vector<9x512xf32> to vector<9x496xf32>
    %40 = vector.extract_strided_slice %31 {offsets = [0, 0], sizes = [9, 16], strides = [1, 1]} : vector<9x512xf32> to vector<9x16xf32>
    %41 = tpu.concatenate %39, %40 in 1 : vector<9x496xf32>, vector<9x16xf32> -> vector<9x512xf32>
    %42 = vector.broadcast %28 : vector<1x512xf32> to vector<9x512xf32>
    %43 = arith.mulf %41, %42 : vector<9x512xf32>
    %44 = arith.addf %38, %43 : vector<9x512xf32>
    %45 = vector.extract_strided_slice %32 {offsets = [0, 17], sizes = [9, 495], strides = [1, 1]} : vector<9x512xf32> to vector<9x495xf32>
    %46 = vector.extract_strided_slice %32 {offsets = [0, 0], sizes = [9, 17], strides = [1, 1]} : vector<9x512xf32> to vector<9x17xf32>
    %47 = tpu.concatenate %45, %46 in 1 : vector<9x495xf32>, vector<9x17xf32> -> vector<9x512xf32>
    %48 = arith.mulf %27, %28 : vector<1x512xf32>
    %49 = vector.broadcast %48 : vector<1x512xf32> to vector<9x512xf32>
    %50 = arith.mulf %47, %49 : vector<9x512xf32>
    %51 = arith.addf %44, %50 : vector<9x512xf32>
    %c0_17 = arith.constant 0 : index
    %c0_18 = arith.constant 0 : index
    %52 = vector.load %arg5[%c0_17, %c0_18] : memref<9x1xf32, #tpu.memory_space<vmem>>, vector<9x1xf32>
    %53 = vector.broadcast %52 : vector<9x1xf32> to vector<9x512xf32>
    %54 = arith.addf %51, %53 : vector<9x512xf32>
    %c0_19 = arith.constant 0 : index
    %c0_20 = arith.constant 0 : index
    %55 = vector.load %arg1[%c0_19, %c0_20] : memref<9x512xf32, #tpu.memory_space<vmem>>, vector<9x512xf32>
    %56 = arith.addf %54, %55 : vector<9x512xf32>
    %57 = vector.extract_strided_slice %56 {offsets = [0, 0], sizes = [5, 512], strides = [1, 1]} : vector<9x512xf32> to vector<5x512xf32>
    %c0_21 = arith.constant 0 : index
    %c0_22 = arith.constant 0 : index
    %58 = vector.load %arg8[%c0_21, %c0_22] : memref<5x512xf32, #tpu.memory_space<vmem>>, vector<5x512xf32>
    tpu.vector_store %arg8[%c0_21, %c0_22], %57 {strides = array<i32>} : memref<5x512xf32, #tpu.memory_space<vmem>>, vector<5x512xf32>,
    %59 = vector.extract_strided_slice %56 {offsets = [5, 0], sizes = [4, 512], strides = [1, 1]} : vector<9x512xf32> to vector<4x512xf32>
    %c0_23 = arith.constant 0 : index
    %c0_24 = arith.constant 0 : index
    %60 = vector.load %arg9[%c0_23, %c0_24] : memref<4x512xf32, #tpu.memory_space<vmem>>, vector<4x512xf32>
    tpu.vector_store %arg9[%c0_23, %c0_24], %59 {strides = array<i32>} : memref<4x512xf32, #tpu.memory_space<vmem>>, vector<4x512xf32>,
    return
  }
}

module attributes {stable_mosaic.version = 11 : i64} {
  func.func @_dense_rest_kernel(%arg0: memref<5x512xf32, #tpu.memory_space<vmem>>, %arg1: memref<4x512xf32, #tpu.memory_space<vmem>>, %arg2: memref<5x1xf32, #tpu.memory_space<vmem>>, %arg3: memref<5x1xf32, #tpu.memory_space<vmem>>, %arg4: memref<32x5xf32, #tpu.memory_space<vmem>>, %arg5: memref<4x1xf32, #tpu.memory_space<vmem>>, %arg6: memref<1x512xf32, #tpu.memory_space<vmem>>, %arg7: memref<1x512xf32, #tpu.memory_space<vmem>>, %arg8: memref<4x512xf32, #tpu.memory_space<vmem>>) attributes {dimension_semantics = [], scalar_prefetch = 0 : i64, scratch_operands = 0 : i64, tpu.core_type = #tpu.core_type<tc>} {
    %c0 = arith.constant 0 : index
    %c0_0 = arith.constant 0 : index
    %0 = vector.load %arg0[%c0, %c0_0] : memref<5x512xf32, #tpu.memory_space<vmem>>, vector<5x512xf32>
    %c0_1 = arith.constant 0 : index
    %c0_2 = arith.constant 0 : index
    %1 = vector.load %arg2[%c0_1, %c0_2] : memref<5x1xf32, #tpu.memory_space<vmem>>, vector<5x1xf32>
    %c0_3 = arith.constant 0 : index
    %c0_4 = arith.constant 0 : index
    %2 = vector.load %arg3[%c0_3, %c0_4] : memref<5x1xf32, #tpu.memory_space<vmem>>, vector<5x1xf32>
    %cst = arith.constant dense<0.000000e+00> : vector<5xf32>
    %3 = vector.multi_reduction <add>, %0, %cst [1] : vector<5x512xf32> to vector<5xf32>
    %4 = vector.shape_cast %3 : vector<5xf32> to vector<5x1xf32>
    %cst_5 = arith.constant 0.001953125 : f32
    %5 = vector.broadcast %cst_5 : f32 to vector<5x1xf32>
    %6 = arith.mulf %4, %5 : vector<5x1xf32>
    %7 = vector.broadcast %6 : vector<5x1xf32> to vector<5x512xf32>
    %8 = arith.subf %0, %7 : vector<5x512xf32>
    %9 = arith.mulf %8, %8 : vector<5x512xf32>
    %cst_6 = arith.constant dense<0.000000e+00> : vector<5xf32>
    %10 = vector.multi_reduction <add>, %9, %cst_6 [1] : vector<5x512xf32> to vector<5xf32>
    %11 = vector.shape_cast %10 : vector<5xf32> to vector<5x1xf32>
    %cst_7 = arith.constant 0.001953125 : f32
    %12 = vector.broadcast %cst_7 : f32 to vector<5x1xf32>
    %13 = arith.mulf %11, %12 : vector<5x1xf32>
    %cst_8 = arith.constant 9.99999996E-13 : f32
    %14 = vector.broadcast %cst_8 : f32 to vector<5x1xf32>
    %15 = arith.addf %13, %14 : vector<5x1xf32>
    %16 = math.rsqrt %15 : vector<5x1xf32>
    %17 = vector.broadcast %16 : vector<5x1xf32> to vector<5x512xf32>
    %18 = arith.mulf %8, %17 : vector<5x512xf32>
    %19 = vector.broadcast %1 : vector<5x1xf32> to vector<5x512xf32>
    %20 = arith.mulf %18, %19 : vector<5x512xf32>
    %21 = vector.broadcast %2 : vector<5x1xf32> to vector<5x512xf32>
    %22 = arith.addf %20, %21 : vector<5x512xf32>
    %cst_9 = arith.constant 0.000000e+00 : f32
    %23 = vector.broadcast %cst_9 : f32 to vector<5x512xf32>
    %24 = arith.maximumf %22, %23 : vector<5x512xf32>
    %c0_10 = arith.constant 0 : index
    %c0_11 = arith.constant 0 : index
    %25 = vector.load %arg4[%c0_10, %c0_11] : memref<32x5xf32, #tpu.memory_space<vmem>>, vector<32x5xf32>
    %cst_12 = arith.constant dense<0.000000e+00> : vector<32x512xf32>
    %26 = tpu.matmul %25, %24, %cst_12 {dimension_numbers = #tpu.dot_dimension_numbers<[1], [0], [0], [1], [0, 0, 1, 1], [], []>} : vector<32x5xf32>, vector<5x512xf32>, vector<32x512xf32> -> vector<32x512xf32>
    %c0_13 = arith.constant 0 : index
    %c0_14 = arith.constant 0 : index
    %27 = vector.load %arg6[%c0_13, %c0_14] : memref<1x512xf32, #tpu.memory_space<vmem>>, vector<1x512xf32>
    %c0_15 = arith.constant 0 : index
    %c0_16 = arith.constant 0 : index
    %28 = vector.load %arg7[%c0_15, %c0_16] : memref<1x512xf32, #tpu.memory_space<vmem>>, vector<1x512xf32>
    %29 = vector.extract_strided_slice %26 {offsets = [0, 0], sizes = [4, 512], strides = [1, 1]} : vector<32x512xf32> to vector<4x512xf32>
    %30 = vector.extract_strided_slice %26 {offsets = [8, 0], sizes = [4, 512], strides = [1, 1]} : vector<32x512xf32> to vector<4x512xf32>
    %31 = vector.extract_strided_slice %26 {offsets = [16, 0], sizes = [4, 512], strides = [1, 1]} : vector<32x512xf32> to vector<4x512xf32>
    %32 = vector.extract_strided_slice %26 {offsets = [24, 0], sizes = [4, 512], strides = [1, 1]} : vector<32x512xf32> to vector<4x512xf32>
    %33 = vector.extract_strided_slice %30 {offsets = [0, 1], sizes = [4, 511], strides = [1, 1]} : vector<4x512xf32> to vector<4x511xf32>
    %34 = vector.extract_strided_slice %30 {offsets = [0, 0], sizes = [4, 1], strides = [1, 1]} : vector<4x512xf32> to vector<4x1xf32>
    %35 = tpu.concatenate %33, %34 in 1 : vector<4x511xf32>, vector<4x1xf32> -> vector<4x512xf32>
    %36 = vector.broadcast %27 : vector<1x512xf32> to vector<4x512xf32>
    %37 = arith.mulf %35, %36 : vector<4x512xf32>
    %38 = arith.addf %29, %37 : vector<4x512xf32>
    %39 = vector.extract_strided_slice %31 {offsets = [0, 16], sizes = [4, 496], strides = [1, 1]} : vector<4x512xf32> to vector<4x496xf32>
    %40 = vector.extract_strided_slice %31 {offsets = [0, 0], sizes = [4, 16], strides = [1, 1]} : vector<4x512xf32> to vector<4x16xf32>
    %41 = tpu.concatenate %39, %40 in 1 : vector<4x496xf32>, vector<4x16xf32> -> vector<4x512xf32>
    %42 = vector.broadcast %28 : vector<1x512xf32> to vector<4x512xf32>
    %43 = arith.mulf %41, %42 : vector<4x512xf32>
    %44 = arith.addf %38, %43 : vector<4x512xf32>
    %45 = vector.extract_strided_slice %32 {offsets = [0, 17], sizes = [4, 495], strides = [1, 1]} : vector<4x512xf32> to vector<4x495xf32>
    %46 = vector.extract_strided_slice %32 {offsets = [0, 0], sizes = [4, 17], strides = [1, 1]} : vector<4x512xf32> to vector<4x17xf32>
    %47 = tpu.concatenate %45, %46 in 1 : vector<4x495xf32>, vector<4x17xf32> -> vector<4x512xf32>
    %48 = arith.mulf %27, %28 : vector<1x512xf32>
    %49 = vector.broadcast %48 : vector<1x512xf32> to vector<4x512xf32>
    %50 = arith.mulf %47, %49 : vector<4x512xf32>
    %51 = arith.addf %44, %50 : vector<4x512xf32>
    %c0_17 = arith.constant 0 : index
    %c0_18 = arith.constant 0 : index
    %52 = vector.load %arg5[%c0_17, %c0_18] : memref<4x1xf32, #tpu.memory_space<vmem>>, vector<4x1xf32>
    %53 = vector.broadcast %52 : vector<4x1xf32> to vector<4x512xf32>
    %54 = arith.addf %51, %53 : vector<4x512xf32>
    %c0_19 = arith.constant 0 : index
    %c0_20 = arith.constant 0 : index
    %55 = vector.load %arg1[%c0_19, %c0_20] : memref<4x512xf32, #tpu.memory_space<vmem>>, vector<4x512xf32>
    %56 = arith.addf %54, %55 : vector<4x512xf32>
    %c0_21 = arith.constant 0 : index
    %c0_22 = arith.constant 0 : index
    %57 = vector.load %arg8[%c0_21, %c0_22] : memref<4x512xf32, #tpu.memory_space<vmem>>, vector<4x512xf32>
    tpu.vector_store %arg8[%c0_21, %c0_22], %56 {strides = array<i32>} : memref<4x512xf32, #tpu.memory_space<vmem>>, vector<4x512xf32>,
    return
  }
}

</mosaic_0001>

<bundles_post_ra>
// kernel: tile.0
= control target key start
LH: loop header
LB: loop body
LE: loop exit
PB: predicated region body
PF: predicated region fallthrough
CT: control target
= control target key end

     0   :  { %s34_s8 = smov 125   ;;  %s35_s9 = smov 126   ;;  %vm7_vm0 = vcmask 7168   ;;  %s61_s0 = inlined_call_operand.vmem [shape: f32[4,4], index: 0, kind: input, shape index: {}]   ;;  %s62_s1 = inlined_call_operand.vmem [shape: f32[16,1], index: 1, kind: output, shape index: {}]  }
   0x1   :  { %v4_v0 = vld [vmem:[%s61_s0] sm:$0xf]  ;;  %s33_s0 = smov 127  }
   0x2   :  { %5 = vst [vmem:[#allocation0] sm:$0xf] %v4_v0 }
   0x9   :  { %v9_v1 = vld [vmem:[#allocation0] sm:$0xf]  }
   0xa   :  { %v21_v2 = vld [vmem:[#allocation0] sm:$0xf]   ;;  %10 = vrot.lane.b32.xlu0 %v9_v1, %s33_s0 }
   0xb   :  { %22 = vrot.lane.b32.xlu1 %v21_v2, %s34_s8  ;;  %v15_v3 = vld [vmem:[#allocation0] sm:$0xf]  }
   0xc   :  { %v6_v4 = vld [vmem:[#allocation0] sm:$0xf]  }
   0xd   :  { %8 = vst.msk [vmem:[%s62_s1] ss:$4 sm:$0xf] %vm7_vm0, %v6_v4  }
  0x12   :  { %16 = vrot.lane.b32.xlu0 %v15_v3, %s35_s9 }
  0x7c   :  { %v11_v5 = vpop.permute.xlu0 %10  }
  0x7d   :  { %v23_v6 = vpop.permute.xlu1 %22   ;;  %27 = vst.msk [vmem:[%s62_s1 + $0x1] ss:$4 sm:$0xf] %vm7_vm0, %v11_v5  }
  0x7e   :  { %29 = vst.msk [vmem:[%s62_s1 + $0x3] ss:$4 sm:$0xf] %vm7_vm0, %v23_v6  }
  0x84   :  { %v17_v7 = vpop.permute.xlu0 %16  }
  0x85   :  { %28 = vst.msk [vmem:[%s62_s1 + $0x2] ss:$4 sm:$0xf] %vm7_vm0, %v17_v7  }

// kernel: tile.6
= control target key start
LH: loop header
LB: loop body
LE: loop exit
PB: predicated region body
PF: predicated region fallthrough
CT: control target
= control target key end

     0   :  { %s22_s0 = inlined_call_operand.vmem [shape: f32[4], index: 0, kind: input, shape index: {}]   ;;  %s23_s1 = inlined_call_operand.vmem [shape: f32[4,4], index: 1, kind: output, shape index: {}]  }
   0x1   :  { %v4_v0 = vld [vmem:[%s22_s0] ss:$0 sm:$0xff] }
   0x2   :  { %5 = vst [vmem:[%s23_s1] sm:$0xf] %v4_v0 }

// kernel: _lambda_.4
= control target key start
LH: loop header
LB: loop body
LE: loop exit
PB: predicated region body
PF: predicated region fallthrough
CT: control target
= control target key end

     0   :  { %vm23_vm0 = vcmask 1043456   ;;  %v121_v3 = vmov 0   ;;  %vm72_vm4 = vcmask 31744   ;;  %s183_s0 = inlined_call_operand.vmem [shape: f32[4,128], index: 0, kind: input, shape index: {}]   ;;  %s184_s1 = inlined_call_operand.vmem [shape: f32[4,1], index: 1, kind: input, shape index: {}]   ;;  %s185_s2 = inlined_call_operand.vmem [shape: f32[4,1], index: 2, kind: input, shape index: {}]   ;;  %s186_s4 = inlined_call_operand.vmem [shape: f32[16,1], index: 4, kind: input, shape index: {}]   ;;  %s187_s3 = inlined_call_operand.vmem [shape: f32[16,4], index: 3, kind: input, shape index: {}]   ;;  %s188_s5 = inlined_call_operand.vmem [shape: f32[16,128], index: 5, kind: output, shape index: {}]  }
   0x1   :  { %v20_v0 = vld [vmem:[%s183_s0] sm:$0xf]  ;;  %116 = vset.pattern.permute.xlu1 %v121_v3  ;;  %117 = vset.pattern.permute.xlu2 %v121_v3  ;;  %v61_v14 = vld [vmem:[%s186_s4 + $0x8] sm:$0xff] }
   0x2   :  { %v24_v1 = vsel %vm23_vm0, %v20_v0, 0.0  ;;  %v21_v2 = vld [vmem:[%s184_s1] sm:$0xf]  ;;  %118 = vset.pattern.permute.xlu0 %v121_v3  ;;  %v59_v28 = vld [vmem:[%s187_s3 + $0x8] sm:$0xff] }
   0x3   :  { %25 = vadd.xlane.f32.xlu0 %v24_v1  ;;  %48 = vperm.xlu1 %116, %v21_v2   ;;  %v22_v4 = vld [vmem:[%s185_s2] sm:$0xf] }
   0x4   :  { %v60_v10 = vld [vmem:[%s186_s4] sm:$0xff] }
   0x5   :  { %64 = vperm.xlu2 %117, %v60_v10   ;;  %v58_v27 = vld [vmem:[%s187_s3] sm:$0xff] }
   0xb   :  { %54 = vperm.xlu1 %116, %v22_v4  }
   0xd   :  { %69 = vperm.xlu2 %117, %v61_v14  }
  0x5f   :  { %v65_v29 = vpop.permute.xlu2 %64 }
  0x67   :  { %v70_v30 = vpop.permute.xlu2 %69 }
  0x75   :  { %v49_v19 = vpop.permute.xlu1 %48 }
  0x76   :  { %v26_v5 = vpop.xlane.xlu0 %25 }
  0x77   :  { %v27_v6 = vmul.f32 0.0078125, %v26_v5 }
  0x79   :  { %v28_v7 = vsub.f32 %v20_v0, %v27_v6 }
  0x7b   :  { %v29_v8 = vmul.f32 %v28_v7, %v28_v7 }
  0x7d   :  { %v30_v9 = vsel %vm23_vm0, %v29_v8, 0.0  ;;  %v55_v25 = vpop.permute.xlu1 %54 }
  0x7e   :  { %31 = vadd.xlane.f32.xlu0 %v30_v9 }
  0xf1   :  { %v32_v11 = vpop.xlane.xlu0 %31 }
  0xf2   :  { %v33_v12 = vmul.f32 0.0078125, %v32_v11 }
  0xf4   :  { %v34_v13 = vadd.f32 1e-12, %v33_v12 }
  0xf6   :  { %119 = vrsqrt.f32 %v34_v13  ;;  %vm41_vm2 = vweird.f32 %v34_v13 }
  0xfc   :  { %v120_v15 = vpop.eup %119 }
  0xfd   :  { %v36_v16 = vmul.f32 %v120_v15, %v34_v13  ;;  %vm42_vm1 = vweird.f32 %v120_v15 }
  0xfe   :  { %vm43_vm3 = vmor %vm41_vm2, %vm42_vm1 }
  0xff   :  { %v37_v17 = vmul.f32 %v120_v15, %v36_v16 }
 0x101   :  { %v38_v18 = vmul.f32 0.5, %v37_v17 }
 0x103   :  { %v39_v20 = vsub.f32 1.5, %v38_v18 }
 0x105   :  { %v40_v21 = vmul.f32 %v120_v15, %v39_v20 }
 0x107   :  { %v44_v22 = vsel %vm43_vm3, %v120_v15, %v40_v21 }
 0x108   :  { %v45_v23 = vmul.f32 %v44_v22, %v28_v7 }
 0x10a   :  { %v51_v24 = vmul.f32 %v49_v19, %v45_v23 }
 0x10c   :  { %v57_v26 = vadd.f32 %v55_v25, %v51_v24 }
 0x10e   :  { %111 = vmatpush.msk.msra.mxu0 %vm23_vm0, %v57_v26  ;;  %114 = vmatpush.msk.msra.mxu1 %vm23_vm0, %v57_v26 }
 0x10f   :  { %112 = vmatmul.msk.f32.vlgmr.msra.gmra.mxu0 %vm72_vm4, %v58_v27  ;;  %113 = vmatmul.msk.f32.vlgmr.msra.gmra.mxu1 %vm72_vm4, %v59_v28 }
 0x18c   :  { %v99_v31 = vpop.f32.mrf.mxu0  ;;  %v102_v32 = vpop.f32.mrf.mxu1 }
 0x18d   :  { %v100_v33 = vadd.f32 %v99_v31, %v65_v29  ;;  %v103_v34 = vadd.f32 %v102_v32, %v70_v30 }
 0x18f   :  { %105 = vst [vmem:[%s188_s5] sm:$0xff] %v100_v33 }
 0x190   :  { %106 = vst [vmem:[%s188_s5 + $0x8] sm:$0xff] %v103_v34 }

// kernel: _lambda_.5
= control target key start
LH: loop header
LB: loop body
LE: loop exit
PB: predicated region body
PF: predicated region fallthrough
CT: control target
= control target key end

     0   :  { %v1034_v2 = vmov 0   ;;  %vm57_vm0 = vcmask 1043456   ;;  %v1035_v15 = vmov 839922192   ;;  %vm272_vm7 = vcmask 31744   ;;  %s1037_s20 = smov 112   ;;  %s1540_s0 = inlined_call_operand.vmem [shape: f32[4,512], index: 0, kind: input, shape index: {}]   ;;  %s1541_s5 = inlined_call_operand.vmem [shape: f32[4,1], index: 5, kind: input, shape index: {}]   ;;  %s1542_s1 = inlined_call_operand.vmem [shape: f32[4,512], index: 1, kind: input, shape index: {}]   ;;  %s1543_s2 = inlined_call_operand.vmem [shape: f32[4,1], index: 2, kind: input, shape index: {}]   ;;  %s1544_s4 = inlined_call_operand.vmem [shape: f32[4,1], index: 4, kind: input, shape index: {}]   ;;  %s1545_s3 = inlined_call_operand.vmem [shape: f32[4,1], index: 3, kind: input, shape index: {}]   ;;  %s1546_s7 = inlined_call_operand.vmem [shape: f32[64,4], index: 7, kind: input, shape index: {}]   ;;  %s1547_s6 = inlined_call_operand.vmem [shape: f32[64,4], index: 6, kind: input, shape index: {}]   ;;  %s1548_s8 = inlined_call_operand.vmem [shape: f32[15,1], index: 8, kind: input, shape index: {}]   ;;  %s1549_s9 = inlined_call_operand.vmem [shape: f32[1,512], index: 9, kind: input, shape index: {}]   ;;  %s1550_s10 = inlined_call_operand.vmem [shape: f32[1,512], index: 10, kind: input, shape index: {}]   ;;  %s1551_s11 = inlined_call_operand.vmem [shape: f32[6,512], index: 11, kind: output, shape index: {0}]   ;;  %s1552_s12 = inlined_call_operand.vmem [shape: f32[9,512], index: 12, kind: output, shape index: {1}]  }
   0x1   :  { %v40_v0 = vld [vmem:[%s1540_s0] sm:$0xff]  ;;  %v41_v1 = vld [vmem:[%s1540_s0 + $0x8] sm:$0xff]  ;;  %1028 = vset.pattern.permute.xlu2 %v1034_v2  ;;  %1029 = vset.pattern.permute.xlu0 %v1034_v2  ;;  %v70_v16 = vunpack.c.l.s4 %v1035_v15  ;;  %s1038_s21 = smov 111   ;;  %vm700_vm8 = vcmask 1039360   ;;  %vm768_vm9 = vcmask 916480   ;;  %vm836_vm10 = vcmask 908288  }
   0x2   :  { %v147_v3 = vld [vmem:[%s1541_s5] sm:$0xf]  ;;  %46 = vst [vmem:[#allocation1] ss:$2 sm:$0xff] %v40_v0  ;;  %1027 = vset.pattern.permute.xlu1 %v1034_v2  ;;  %v145_v26 = vld [vmem:[%s1542_s1 + $0x8] sm:$0xff]  ;;  %vm913_vm11 = vcmask 1041408  }
   0x3   :  { %236 = vperm.xlu2 %1028, %v147_v3   ;;  %48 = vst [vmem:[#allocation1 + $0x10] ss:$2 sm:$0xff] %v41_v1  ;;  %v1117_v17 = vunpack.c.0.s8 %v70_v16  ;;  %v144_v25 = vld [vmem:[%s1542_s1] sm:$0xff] }
   0x4   :  { %v42_v49 = vld [vmem:[%s1543_s2] sm:$0xf] }
   0x9   :  { %v49_v4 = vld.sshfl [vmem:[#allocation1] sm:$0xff pattern:$0x75316420]  ;;  %v50_v5 = vld.sshfl [vmem:[#allocation1 + $0x8] sm:$0xff pattern:$0x75316420] }
   0xa   :  { %v51_v6 = vld.sshfl [vmem:[#allocation1 + $0x10] sm:$0xff pattern:$0x75316420]  ;;  %v52_v7 = vld.sshfl [vmem:[#allocation1 + $0x18] sm:$0xff pattern:$0x75316420] }
   0xb   :  { %v58_v8 = vsel %vm57_vm0, %v49_v4, 0.0  ;;  %v59_v9 = vsel %vm57_vm0, %v50_v5, 0.0  ;;  %v61_v10 = vsel %vm57_vm0, %v51_v6, 0.0  ;;  %v63_v12 = vsel %vm57_vm0, %v52_v7, 0.0  ;;  %v146_v4 = vld [vmem:[%s1544_s4] sm:$0xf] }
   0xc   :  { %v60_v11 = vadd.f32 %v59_v9, %v58_v8  ;;  %v43_v5 = vld [vmem:[%s1545_s3] sm:$0xf] }
   0xe   :  { %v62_v13 = vadd.f32 %v61_v10, %v60_v11 }
  0x10   :  { %v64_v14 = vadd.f32 %v63_v12, %v62_v13 }
  0x12   :  { %65 = vadd.xlane.f32.xlu0 %v64_v14 }
  0x5d   :  { %v237_v6 = vpop.permute.xlu2 %236 }
  0x85   :  { %v66_v18 = vpop.xlane.xlu0 %65 }
  0x86   :  { %v67_v19 = vmul.f32 0.001953125, %v66_v18 }
  0x88   :  { %v72_v20 = vperm.slane %v67_v19, %v1117_v17 }
  0x8a   :  { %v1120_v21 = vsub.f32 %v40_v0, %v72_v20  ;;  %v1122_v22 = vsub.f32 %v41_v1, %v72_v20 }
  0x8c   :  { %v76_v23 = vmul.f32 %v1120_v21, %v1120_v21  ;;  %v77_v24 = vmul.f32 %v1122_v22, %v1122_v22 }
  0x8e   :  { %80 = vst [vmem:[#allocation1] ss:$2 sm:$0xff] %v76_v23 }
  0x8f   :  { %82 = vst [vmem:[#allocation1 + $0x10] ss:$2 sm:$0xff] %v77_v24 }
  0x95   :  { %v83_v27 = vld.sshfl [vmem:[#allocation1] sm:$0xff pattern:$0x75316420]  ;;  %v84_v28 = vld.sshfl [vmem:[#allocation1 + $0x8] sm:$0xff pattern:$0x75316420] }
  0x96   :  { %v85_v29 = vld.sshfl [vmem:[#allocation1 + $0x10] sm:$0xff pattern:$0x75316420]  ;;  %v86_v30 = vld.sshfl [vmem:[#allocation1 + $0x18] sm:$0xff pattern:$0x75316420] }
  0x97   :  { %v91_v31 = vsel %vm57_vm0, %v83_v27, 0.0  ;;  %v92_v32 = vsel %vm57_vm0, %v84_v28, 0.0  ;;  %150 = vst [vmem:[#allocation1] ss:$2 sm:$0xff] %v144_v25  ;;  %v94_v34 = vsel %vm57_vm0, %v85_v29, 0.0  ;;  %v96_v36 = vsel %vm57_vm0, %v86_v30, 0.0 }
  0x98   :  { %v93_v33 = vadd.f32 %v92_v32, %v91_v31  ;;  %152 = vst [vmem:[#allocation1 + $0x10] ss:$2 sm:$0xff] %v145_v26 }
  0x9a   :  { %v95_v35 = vadd.f32 %v94_v34, %v93_v33 }
  0x9c   :  { %v97_v37 = vadd.f32 %v96_v36, %v95_v35  ;;  %v241_v36 = vperm.slane %v237_v6, %v1117_v17  ;;  %v249_v6 = vld [vmem:[%s1547_s6 + $0x10] sm:$0xff] }
  0x9e   :  { %98 = vadd.xlane.f32.xlu2 %v97_v37  ;;  %v153_v38 = vld.sshfl [vmem:[#allocation1] sm:$0xff pattern:$0x75316420]  ;;  %v154_v39 = vld.sshfl [vmem:[#allocation1 + $0x8] sm:$0xff pattern:$0x75316420] }
  0x9f   :  { %v155_v40 = vld.sshfl [vmem:[#allocation1 + $0x10] sm:$0xff pattern:$0x75316420]  ;;  %v156_v41 = vld.sshfl [vmem:[#allocation1 + $0x18] sm:$0xff pattern:$0x75316420] }
  0xa0   :  { %v161_v42 = vsel %vm57_vm0, %v153_v38, 0.0  ;;  %v162_v43 = vsel %vm57_vm0, %v154_v39, 0.0  ;;  %v164_v44 = vsel %vm57_vm0, %v155_v40, 0.0  ;;  %v166_v46 = vsel %vm57_vm0, %v156_v41, 0.0 }
  0xa1   :  { %v163_v45 = vadd.f32 %v162_v43, %v161_v42 }
  0xa3   :  { %v165_v47 = vadd.f32 %v164_v44, %v163_v45 }
  0xa5   :  { %v167_v48 = vadd.f32 %v166_v46, %v165_v47 }
  0xa7   :  { %168 = vadd.xlane.f32.xlu0 %v167_v48 }
  0xbb   :  { %122 = vperm.xlu0 %1029, %v42_v49  }
 0x111   :  { %v99_v7 = vpop.xlane.xlu2 %98 }
 0x112   :  { %v100_v8 = vmul.f32 0.001953125, %v99_v7  ;;  %v250_v7 = vld [vmem:[%s1547_s6 + $0x18] sm:$0xff] }
 0x114   :  { %v101_v9 = vadd.f32 1e-12, %v100_v8  ;;  %v251_v8 = vld [vmem:[%s1547_s6 + $0x20] sm:$0xff] }
 0x116   :  { %1030 = vrsqrt.f32 %v101_v9  ;;  %vm108_vm5 = vweird.f32 %v101_v9 }
 0x11a   :  { %v169_v50 = vpop.xlane.xlu0 %168 }
 0x11b   :  { %v170_v51 = vmul.f32 0.001953125, %v169_v50 }
 0x11c   :  { %v1031_v11 = vpop.eup %1030 }
 0x11d   :  { %v175_v52 = vperm.slane %v170_v51, %v1117_v17  ;;  %v103_v14 = vmul.f32 %v1031_v11, %v101_v9  ;;  %vm109_vm2 = vweird.f32 %v1031_v11  ;;  %v252_v9 = vld [vmem:[%s1547_s6 + $0x28] sm:$0xff] }
 0x11e   :  { %vm110_vm6 = vmor %vm108_vm5, %vm109_vm2 }
 0x11f   :  { %v177_v53 = vsub.f32 %v144_v25, %v175_v52  ;;  %v178_v54 = vsub.f32 %v145_v26, %v175_v52  ;;  %v104_v15 = vmul.f32 %v1031_v11, %v103_v14 }
 0x121   :  { %v179_v55 = vmul.f32 %v177_v53, %v177_v53  ;;  %v180_v56 = vmul.f32 %v178_v54, %v178_v54  ;;  %v105_v18 = vmul.f32 0.5, %v104_v15 }
 0x123   :  { %183 = vst [vmem:[#allocation1] ss:$2 sm:$0xff] %v179_v55  ;;  %v106_v23 = vsub.f32 1.5, %v105_v18 }
 0x124   :  { %185 = vst [vmem:[#allocation1 + $0x10] ss:$2 sm:$0xff] %v180_v56 }
 0x125   :  { %v107_v26 = vmul.f32 %v1031_v11, %v106_v23 }
 0x127   :  { %v111_v30 = vsel %vm110_vm6, %v1031_v11, %v107_v26  ;;  %v254_v11 = vld [vmem:[%s1547_s6 + $0x38] sm:$0xff] }
 0x128   :  { %v116_v37 = vperm.slane %v111_v30, %v1117_v17 }
 0x12a   :  { %v186_v57 = vld.sshfl [vmem:[#allocation1] sm:$0xff pattern:$0x75316420]  ;;  %v187_v58 = vld.sshfl [vmem:[#allocation1 + $0x8] sm:$0xff pattern:$0x75316420]  ;;  %v118_v43 = vmul.f32 %v116_v37, %v1120_v21  ;;  %v119_v47 = vmul.f32 %v116_v37, %v1122_v22 }
 0x12b   :  { %v188_v59 = vld.sshfl [vmem:[#allocation1 + $0x10] sm:$0xff pattern:$0x75316420]  ;;  %v194_v60 = vsel %vm57_vm0, %v186_v57, 0.0  ;;  %v195_v61 = vsel %vm57_vm0, %v187_v58, 0.0  ;;  %v256_v57 = vld [vmem:[%s1546_s7 + $0x8] sm:$0xff] }
 0x12c   :  { %v189_v62 = vld.sshfl [vmem:[#allocation1 + $0x18] sm:$0xff pattern:$0x75316420]  ;;  %v196_v63 = vadd.f32 %v195_v61, %v194_v60  ;;  %v197_v0 = vsel %vm57_vm0, %v188_v59, 0.0 }
 0x12d   :  { %v199_v2 = vsel %vm57_vm0, %v189_v62, 0.0  ;;  %v123_v35 = vpop.permute.xlu0 %122  ;;  %v257_v62 = vld [vmem:[%s1546_s7 + $0x10] sm:$0xff] }
 0x12e   :  { %v198_v1 = vadd.f32 %v197_v0, %v196_v63  ;;  %v127_v40 = vperm.slane %v123_v35, %v1117_v17  ;;  %v258_v63 = vld [vmem:[%s1546_s7 + $0x18] sm:$0xff]  ;;  %v259_v0 = vld [vmem:[%s1546_s7 + $0x20] sm:$0xff] }
 0x130   :  { %v200_v3 = vadd.f32 %v199_v2, %v198_v1  ;;  %v129_v48 = vmul.f32 %v127_v40, %v118_v43  ;;  %v130_v50 = vmul.f32 %v127_v40, %v119_v47  ;;  %v260_v1 = vld [vmem:[%s1546_s7 + $0x28] sm:$0xff]  ;;  %v261_v2 = vld [vmem:[%s1546_s7 + $0x30] sm:$0xff] }
 0x132   :  { %201 = vadd.xlane.f32.xlu1 %v200_v3  ;;  %v262_v3 = vld [vmem:[%s1546_s7 + $0x38] sm:$0xff] }
 0x14b   :  { %225 = vperm.xlu1 %1027, %v146_v4   ;;  %v247_v4 = vld [vmem:[%s1547_s6] sm:$0xff] }
 0x153   :  { %133 = vperm.xlu1 %1027, %v43_v5   ;;  %v248_v5 = vld [vmem:[%s1547_s6 + $0x8] sm:$0xff] }
 0x1a5   :  { %v202_v10 = vpop.xlane.xlu1 %201 }
 0x1a6   :  { %v203_v12 = vmul.f32 0.001953125, %v202_v10  ;;  %v253_v10 = vld [vmem:[%s1547_s6 + $0x30] sm:$0xff]  ;;  %s1036_s6 = smov 127  }
 0x1a8   :  { %v204_v13 = vadd.f32 1e-12, %v203_v12 }
 0x1aa   :  { %1032 = vrsqrt.f32 %v204_v13  ;;  %vm211_vm3 = vweird.f32 %v204_v13 }
 0x1b0   :  { %v1033_v16 = vpop.eup %1032 }
 0x1b1   :  { %v206_v19 = vmul.f32 %v1033_v16, %v204_v13  ;;  %vm212_vm1 = vweird.f32 %v1033_v16 }
 0x1b2   :  { %vm213_vm4 = vmor %vm211_vm3, %vm212_vm1 }
 0x1b3   :  { %v207_v20 = vmul.f32 %v1033_v16, %v206_v19 }
 0x1b5   :  { %v208_v24 = vmul.f32 0.5, %v207_v20 }
 0x1b7   :  { %v209_v25 = vsub.f32 1.5, %v208_v24 }
 0x1b9   :  { %v210_v27 = vmul.f32 %v1033_v16, %v209_v25 }
 0x1bb   :  { %v214_v28 = vsel %vm213_vm4, %v1033_v16, %v210_v27 }
 0x1bc   :  { %v219_v29 = vperm.slane %v214_v28, %v1117_v17 }
 0x1bd   :  { %v226_v31 = vpop.permute.xlu1 %225 }
 0x1be   :  { %v221_v32 = vmul.f32 %v219_v29, %v177_v53  ;;  %v222_v33 = vmul.f32 %v219_v29, %v178_v54  ;;  %v230_v34 = vperm.slane %v226_v31, %v1117_v17  ;;  %v255_v54 = vld [vmem:[%s1546_s7] sm:$0xff] }
 0x1c0   :  { %v232_v38 = vmul.f32 %v230_v34, %v221_v32  ;;  %v233_v39 = vmul.f32 %v230_v34, %v222_v33 }
 0x1c2   :  { %v243_v41 = vadd.f32 %v241_v36, %v232_v38  ;;  %v244_v42 = vadd.f32 %v241_v36, %v233_v39 }
 0x1c4   :  { %v245_v44 = vmax.f32 %v243_v41, 0.0  ;;  %v246_v45 = vmax.f32 %v244_v42, 0.0 }
 0x1c5   :  { %v134_v46 = vpop.permute.xlu1 %133 }
 0x1c6   :  { %265 = vst [vmem:[#allocation1] ss:$2 sm:$0xff] %v245_v44  ;;  %v138_v49 = vperm.slane %v134_v46, %v1117_v17 }
 0x1c7   :  { %267 = vst [vmem:[#allocation1 + $0x10] ss:$2 sm:$0xff] %v246_v45 }
 0x1c8   :  { %v140_v51 = vadd.f32 %v138_v49, %v129_v48  ;;  %v141_v52 = vadd.f32 %v138_v49, %v130_v50 }
 0x1ca   :  { %v142_v53 = vmax.f32 %v140_v51, 0.0  ;;  %v143_v56 = vmax.f32 %v141_v52, 0.0 }
 0x1cd   :  { %v268_v21 = vld.sshfl [vmem:[#allocation1] sm:$0xff pattern:$0x75316420]  ;;  %v269_v55 = vld.sshfl [vmem:[#allocation1 + $0x8] sm:$0xff pattern:$0x75316420] }
 0x1ce   :  { %950 = vmatpush.msk.msra.mxu0 %vm57_vm0, %v268_v21  ;;  %959 = vmatpush.msk.msra.mxu1 %vm57_vm0, %v269_v55  ;;  %471 = vst [vmem:[#allocation1] ss:$2 sm:$0xff] %v142_v53  ;;  %v270_v22 = vld.sshfl [vmem:[#allocation1 + $0x10] sm:$0xff pattern:$0x75316420] }
 0x1cf   :  { %968 = vmatpush.msk.msra.mxu2 %vm57_vm0, %v270_v22  ;;  %v271_v17 = vld.sshfl [vmem:[#allocation1 + $0x18] sm:$0xff pattern:$0x75316420]  ;;  %951 = vmatmul.msk.f32.vlgmr.msra.gmra.mxu0 %vm272_vm7, %v255_v54 }
 0x1d0   :  { %977 = vmatpush.msk.msra.mxu3 %vm57_vm0, %v271_v17  ;;  %473 = vst [vmem:[#allocation1 + $0x10] ss:$2 sm:$0xff] %v143_v56  ;;  %960 = vmatmul.msk.f32.vlgmr.msra.gmra.mxu1 %vm272_vm7, %v255_v54 }
 0x1d1   :  { %969 = vmatmul.msk.f32.vlgmr.msra.gmra.mxu2 %vm272_vm7, %v255_v54  ;;  %978 = vmatmul.msk.f32.vlgmr.msra.gmra.mxu3 %vm272_vm7, %v255_v54 }
 0x1d5   :  { %v474_v58 = vld.sshfl [vmem:[#allocation1] sm:$0xff pattern:$0x75316420]  ;;  %v475_v59 = vld.sshfl [vmem:[#allocation1 + $0x8] sm:$0xff pattern:$0x75316420] }
 0x1d6   :  { %986 = vmatpush.msk.msrb.mxu0 %vm57_vm0, %v474_v58  ;;  %995 = vmatpush.msk.msrb.mxu1 %vm57_vm0, %v475_v59 }
 0x1d7   :  { %v476_v60 = vld.sshfl [vmem:[#allocation1 + $0x10] sm:$0xff pattern:$0x75316420]  ;;  %v477_v61 = vld.sshfl [vmem:[#allocation1 + $0x18] sm:$0xff pattern:$0x75316420]  ;;  %952 = vmatmul.msk.f32.gmra.mxu0 %vm272_vm7, %v256_v57 }
 0x1d8   :  { %1004 = vmatpush.msk.msrb.mxu2 %vm57_vm0, %v476_v60  ;;  %1013 = vmatpush.msk.msrb.mxu3 %vm57_vm0, %v477_v61 }
 0x1d9   :  { %961 = vmatmul.msk.f32.gmra.mxu1 %vm272_vm7, %v256_v57  ;;  %970 = vmatmul.msk.f32.gmra.mxu2 %vm272_vm7, %v256_v57 }
 0x1da   :  { %979 = vmatmul.msk.f32.gmra.mxu3 %vm272_vm7, %v256_v57 }
 0x1df   :  { %953 = vmatmul.msk.f32.gmra.mxu0 %vm272_vm7, %v257_v62 }
 0x1e1   :  { %962 = vmatmul.msk.f32.gmra.mxu1 %vm272_vm7, %v257_v62  ;;  %971 = vmatmul.msk.f32.gmra.mxu2 %vm272_vm7, %v257_v62 }
 0x1e2   :  { %980 = vmatmul.msk.f32.gmra.mxu3 %vm272_vm7, %v257_v62 }
 0x1e7   :  { %954 = vmatmul.msk.f32.gmra.mxu0 %vm272_vm7, %v258_v63 }
 0x1e9   :  { %963 = vmatmul.msk.f32.gmra.mxu1 %vm272_vm7, %v258_v63  ;;  %972 = vmatmul.msk.f32.gmra.mxu2 %vm272_vm7, %v258_v63 }
 0x1ea   :  { %981 = vmatmul.msk.f32.gmra.mxu3 %vm272_vm7, %v258_v63 }
 0x1ef   :  { %955 = vmatmul.msk.f32.gmra.mxu0 %vm272_vm7, %v259_v0 }
 0x1f1   :  { %964 = vmatmul.msk.f32.gmra.mxu1 %vm272_vm7, %v259_v0  ;;  %973 = vmatmul.msk.f32.gmra.mxu2 %vm272_vm7, %v259_v0 }
 0x1f2   :  { %982 = vmatmul.msk.f32.gmra.mxu3 %vm272_vm7, %v259_v0 }
 0x1f7   :  { %956 = vmatmul.msk.f32.gmra.mxu0 %vm272_vm7, %v260_v1 }
 0x1f9   :  { %965 = vmatmul.msk.f32.gmra.mxu1 %vm272_vm7, %v260_v1  ;;  %974 = vmatmul.msk.f32.gmra.mxu2 %vm272_vm7, %v260_v1 }
 0x1fa   :  { %983 = vmatmul.msk.f32.gmra.mxu3 %vm272_vm7, %v260_v1 }
 0x1ff   :  { %957 = vmatmul.msk.f32.gmra.mxu0 %vm272_vm7, %v261_v2 }
 0x201   :  { %966 = vmatmul.msk.f32.gmra.mxu1 %vm272_vm7, %v261_v2  ;;  %975 = vmatmul.msk.f32.gmra.mxu2 %vm272_vm7, %v261_v2 }
 0x202   :  { %984 = vmatmul.msk.f32.gmra.mxu3 %vm272_vm7, %v261_v2 }
 0x207   :  { %958 = vmatmul.msk.f32.gmra.mxu0 %vm272_vm7, %v262_v3 }
 0x209   :  { %967 = vmatmul.msk.f32.gmra.mxu1 %vm272_vm7, %v262_v3  ;;  %976 = vmatmul.msk.f32.gmra.mxu2 %vm272_vm7, %v262_v3 }
 0x20a   :  { %985 = vmatmul.msk.f32.gmra.mxu3 %vm272_vm7, %v262_v3 }
 0x20f   :  { %987 = vmatmul.msk.f32.vlgmr.msrb.gmra.mxu0 %vm272_vm7, %v247_v4 }
 0x211   :  { %996 = vmatmul.msk.f32.vlgmr.msrb.gmra.mxu1 %vm272_vm7, %v247_v4  ;;  %1005 = vmatmul.msk.f32.vlgmr.msrb.gmra.mxu2 %vm272_vm7, %v247_v4 }
 0x212   :  { %1014 = vmatmul.msk.f32.vlgmr.msrb.gmra.mxu3 %vm272_vm7, %v247_v4 }
 0x217   :  { %988 = vmatmul.msk.f32.gmra.mxu0 %vm272_vm7, %v248_v5 }
 0x219   :  { %997 = vmatmul.msk.f32.gmra.mxu1 %vm272_vm7, %v248_v5  ;;  %1006 = vmatmul.msk.f32.gmra.mxu2 %vm272_vm7, %v248_v5 }
 0x21a   :  { %1015 = vmatmul.msk.f32.gmra.mxu3 %vm272_vm7, %v248_v5 }
 0x21f   :  { %989 = vmatmul.msk.f32.gmra.mxu0 %vm272_vm7, %v249_v6 }
 0x221   :  { %998 = vmatmul.msk.f32.gmra.mxu1 %vm272_vm7, %v249_v6  ;;  %1007 = vmatmul.msk.f32.gmra.mxu2 %vm272_vm7, %v249_v6 }
 0x222   :  { %1016 = vmatmul.msk.f32.gmra.mxu3 %vm272_vm7, %v249_v6 }
 0x227   :  { %990 = vmatmul.msk.f32.gmra.mxu0 %vm272_vm7, %v250_v7 }
 0x229   :  { %999 = vmatmul.msk.f32.gmra.mxu1 %vm272_vm7, %v250_v7  ;;  %1008 = vmatmul.msk.f32.gmra.mxu2 %vm272_vm7, %v250_v7 }
 0x22a   :  { %1017 = vmatmul.msk.f32.gmra.mxu3 %vm272_vm7, %v250_v7 }
 0x22f   :  { %991 = vmatmul.msk.f32.gmra.mxu0 %vm272_vm7, %v251_v8 }
 0x231   :  { %1000 = vmatmul.msk.f32.gmra.mxu1 %vm272_vm7, %v251_v8  ;;  %1009 = vmatmul.msk.f32.gmra.mxu2 %vm272_vm7, %v251_v8 }
 0x232   :  { %1018 = vmatmul.msk.f32.gmra.mxu3 %vm272_vm7, %v251_v8 }
 0x237   :  { %992 = vmatmul.msk.f32.gmra.mxu0 %vm272_vm7, %v252_v9 }
 0x239   :  { %1001 = vmatmul.msk.f32.gmra.mxu1 %vm272_vm7, %v252_v9  ;;  %1010 = vmatmul.msk.f32.gmra.mxu2 %vm272_vm7, %v252_v9 }
 0x23a   :  { %1019 = vmatmul.msk.f32.gmra.mxu3 %vm272_vm7, %v252_v9 }
 0x23f   :  { %993 = vmatmul.msk.f32.gmra.mxu0 %vm272_vm7, %v253_v10 }
 0x241   :  { %1002 = vmatmul.msk.f32.gmra.mxu1 %vm272_vm7, %v253_v10  ;;  %1011 = vmatmul.msk.f32.gmra.mxu2 %vm272_vm7, %v253_v10 }
 0x242   :  { %1020 = vmatmul.msk.f32.gmra.mxu3 %vm272_vm7, %v253_v10 }
 0x247   :  { %994 = vmatmul.msk.f32.gmra.mxu0 %vm272_vm7, %v254_v11 }
 0x249   :  { %1003 = vmatmul.msk.f32.gmra.mxu1 %vm272_vm7, %v254_v11  ;;  %1012 = vmatmul.msk.f32.gmra.mxu2 %vm272_vm7, %v254_v11 }
 0x24a   :  { %1021 = vmatmul.msk.f32.gmra.mxu3 %vm272_vm7, %v254_v11 }
 0x24c   :  { %v322_v12 = vpop.f32.mrf.mxu0 }
 0x24d   :  { %v363_v13 = vpop.f32.mrf.mxu1 }
 0x254   :  { %v404_v14 = vpop.f32.mrf.mxu2  ;;  %v445_v15 = vpop.f32.mrf.mxu3 }
 0x255   :  { %v325_v16 = vpop.f32.mrf.mxu0 }
 0x256   :  { %v366_v18 = vpop.f32.mrf.mxu1 }
 0x25c   :  { %v407_v19 = vpop.f32.mrf.mxu2 }
 0x25d   :  { %v448_v20 = vpop.f32.mrf.mxu3  ;;  %v328_v23 = vpop.f32.mrf.mxu0 }
 0x25e   :  { %v369_v24 = vpop.f32.mrf.mxu1 }
 0x264   :  { %v410_v25 = vpop.f32.mrf.mxu2 }
 0x265   :  { %v451_v26 = vpop.f32.mrf.mxu3  ;;  %v331_v27 = vpop.f32.mrf.mxu0 }
 0x266   :  { %v372_v28 = vpop.f32.mrf.mxu1 }
 0x26c   :  { %v1284_v29 = vpop.f32.mrf.mxu2 }
 0x26d   :  { %v1286_v30 = vpop.f32.mrf.mxu3  ;;  %v1288_v31 = vpop.f32.mrf.mxu0 }
 0x26e   :  { %v375_v32 = vpop.f32.mrf.mxu1 }
 0x274   :  { %v1290_v33 = vpop.f32.mrf.mxu2 }
 0x275   :  { %v1292_v34 = vpop.f32.mrf.mxu3  ;;  %v337_v35 = vpop.f32.mrf.mxu0 }
 0x276   :  { %v1294_v36 = vpop.f32.mrf.mxu1 }
 0x27c   :  { %v1296_v37 = vpop.f32.mrf.mxu2 }
 0x27d   :  { %v1298_v38 = vpop.f32.mrf.mxu3  ;;  %v1300_v39 = vpop.f32.mrf.mxu0 }
 0x27e   :  { %v1302_v40 = vpop.f32.mrf.mxu1 }
 0x284   :  { %v1304_v41 = vpop.f32.mrf.mxu2 }
 0x285   :  { %v1306_v42 = vpop.f32.mrf.mxu3  ;;  %v1308_v43 = vpop.f32.mrf.mxu0 }
 0x286   :  { %v1310_v44 = vpop.f32.mrf.mxu1 }
 0x28c   :  { %v1312_v45 = vpop.f32.mrf.mxu2 }
 0x28d   :  { %v1314_v46 = vpop.f32.mrf.mxu3  ;;  %v527_v47 = vpop.f32.mrf.mxu0 }
 0x28e   :  { %v1316_v48 = vadd.f32 %v527_v47, %v322_v12  ;;  %v568_v49 = vpop.f32.mrf.mxu1 }
 0x28f   :  { %v1318_v50 = vadd.f32 %v568_v49, %v363_v13 }
 0x294   :  { %v609_v51 = vpop.f32.mrf.mxu2 }
 0x295   :  { %v1320_v52 = vadd.f32 %v609_v51, %v404_v14  ;;  %v650_v53 = vpop.f32.mrf.mxu3  ;;  %v530_v54 = vpop.f32.mrf.mxu0  ;;  %v881_v51 = vld [vmem:[%s1548_s8] sm:$0xff] }
 0x296   :  { %v1322_v21 = vadd.f32 %v650_v53, %v445_v15  ;;  %v1324_v55 = vadd.f32 %v530_v54, %v325_v16  ;;  %v571_v56 = vpop.f32.mrf.mxu1 }
 0x297   :  { %v1326_v22 = vadd.f32 %v571_v56, %v366_v18 }
 0x29c   :  { %v612_v17 = vpop.f32.mrf.mxu2 }
 0x29d   :  { %v1328_v57 = vadd.f32 %v612_v17, %v407_v19  ;;  %v653_v58 = vpop.f32.mrf.mxu3  ;;  %v533_v59 = vpop.f32.mrf.mxu0 }
 0x29e   :  { %v1330_v60 = vadd.f32 %v653_v58, %v448_v20  ;;  %v534_v61 = vadd.f32 %v533_v59, %v328_v23  ;;  %v574_v62 = vpop.f32.mrf.mxu1 }
 0x29f   :  { %v575_v3 = vadd.f32 %v574_v62, %v369_v24 }
 0x2a0   :  { %684 = vrot.lane.b32.xlu1 %v534_v61, %s1036_s6 }
 0x2a4   :  { %v615_v63 = vpop.f32.mrf.mxu2 }
 0x2a5   :  { %v616_v0 = vadd.f32 %v615_v63, %v410_v25  ;;  %v656_v1 = vpop.f32.mrf.mxu3  ;;  %v536_v2 = vpop.f32.mrf.mxu0 }
 0x2a6   :  { %v657_v4 = vadd.f32 %v656_v1, %v451_v26  ;;  %v577_v5 = vpop.f32.mrf.mxu1  ;;  %v537_v9 = vadd.f32 %v536_v2, %v331_v27 }
 0x2a7   :  { %688 = vrot.lane.b32.xlu2 %v616_v0, %s1036_s6  ;;  %v578_v10 = vadd.f32 %v577_v5, %v372_v28 }
 0x2a8   :  { %690 = vrot.lane.b32.xlu0 %v657_v4, %s1036_s6  ;;  %686 = vrot.lane.b32.xlu1 %v575_v3, %s1036_s6  ;;  %v1385_v3 = vld [vmem:[%s1549_s9] sm:$0xf] }
 0x2ac   :  { %v618_v6 = vpop.f32.mrf.mxu2 }
 0x2ad   :  { %v659_v7 = vpop.f32.mrf.mxu3  ;;  %v539_v8 = vpop.f32.mrf.mxu0  ;;  %v619_v16 = vadd.f32 %v618_v6, %v1284_v29 }
 0x2ae   :  { %v580_v11 = vpop.f32.mrf.mxu1  ;;  %v660_v18 = vadd.f32 %v659_v7, %v1286_v30  ;;  %v540_v25 = vadd.f32 %v539_v8, %v1288_v31  ;;  %v722_v7 = vperm.slane %v1385_v3, 2  ;;  %v723_v8 = vperm.slane %v1385_v3, 3 }
 0x2af   :  { %v581_v12 = vadd.f32 %v580_v11, %v375_v32  ;;  %v721_v11 = vperm.slane %v1385_v3, 1 }
 0x2b0   :  { %694 = vrot.lane.b32.xlu0 %v578_v10, %s1036_s6  ;;  %692 = vrot.lane.b32.xlu1 %v537_v9, %s1036_s6  ;;  %v720_v10 = vperm.slane %v1385_v3, 0 }
 0x2b1   :  { %754 = vrot.lane.b32.xlu2 %v581_v12, %s1037_s20 }
 0x2b4   :  { %v621_v13 = vpop.f32.mrf.mxu2 }
 0x2b5   :  { %v662_v14 = vpop.f32.mrf.mxu3  ;;  %v542_v15 = vpop.f32.mrf.mxu0  ;;  %v622_v26 = vadd.f32 %v621_v13, %v1290_v33 }
 0x2b6   :  { %v543_v19 = vadd.f32 %v542_v15, %v337_v35  ;;  %v583_v20 = vpop.f32.mrf.mxu1  ;;  %v663_v30 = vadd.f32 %v662_v14, %v1292_v34  ;;  %v1400_v15 = vld [vmem:[%s1550_s10] sm:$0xf] }
 0x2b7   :  { %v584_v32 = vadd.f32 %v583_v20, %v1294_v36 }
 0x2b8   :  { %698 = vrot.lane.b32.xlu0 %v660_v18, %s1036_s6  ;;  %696 = vrot.lane.b32.xlu1 %v619_v16, %s1036_s6  ;;  %v789_v18 = vperm.slane %v1400_v15, 1 }
 0x2b9   :  { %760 = vrot.lane.b32.xlu2 %v543_v19, %s1037_s20  ;;  %v788_v19 = vperm.slane %v1400_v15, 0 }
 0x2bc   :  { %v624_v23 = vpop.f32.mrf.mxu2 }
 0x2bd   :  { %v665_v24 = vpop.f32.mrf.mxu3  ;;  %v545_v31 = vpop.f32.mrf.mxu0 }
 0x2be   :  { %v666_v27 = vadd.f32 %v665_v24, %v1298_v38  ;;  %v586_v28 = vpop.f32.mrf.mxu1  ;;  %v625_v38 = vadd.f32 %v624_v23, %v1296_v37  ;;  %v546_v47 = vadd.f32 %v545_v31, %v1300_v39  ;;  %v1420_v31 = vmul.f32 %v1400_v15, %v1385_v3 }
 0x2bf   :  { %v587_v36 = vadd.f32 %v586_v28, %v1302_v40  ;;  %v882_v40 = vld [vmem:[%s1548_s8 + $0x8] sm:$0x7f] }
 0x2c0   :  { %756 = vrot.lane.b32.xlu0 %v622_v26, %s1037_s20  ;;  %752 = vrot.lane.b32.xlu1 %v540_v25, %s1037_s20  ;;  %v790_v25 = vperm.slane %v1400_v15, 2 }
 0x2c1   :  { %766 = vrot.lane.b32.xlu2 %v666_v27, %s1037_s20 }
 0x2c4   :  { %v627_v29 = vpop.f32.mrf.mxu2 }
 0x2c5   :  { %v628_v35 = vadd.f32 %v627_v29, %v1304_v41  ;;  %v668_v34 = vpop.f32.mrf.mxu3  ;;  %v548_v37 = vpop.f32.mrf.mxu0 }
 0x2c6   :  { %v589_v33 = vpop.f32.mrf.mxu1  ;;  %v669_v41 = vadd.f32 %v668_v34, %v1306_v42 }
 0x2c7   :  { %v590_v49 = vadd.f32 %v589_v33, %v1310_v44  ;;  %v549_v44 = vadd.f32 %v548_v37, %v1308_v43 }
 0x2c8   :  { %762 = vrot.lane.b32.xlu0 %v584_v32, %s1037_s20  ;;  %758 = vrot.lane.b32.xlu1 %v663_v30, %s1037_s20 }
 0x2c9   :  { %824 = vrot.lane.b32.xlu2 %v628_v35, %s1038_s21  ;;  %v791_v35 = vperm.slane %v1400_v15, 3 }
 0x2cc   :  { %v630_v39 = vpop.f32.mrf.mxu2 }
 0x2cd   :  { %v631_v53 = vadd.f32 %v630_v39, %v1312_v45  ;;  %v671_v54 = vpop.f32.mrf.mxu3  ;;  %v860_v39 = vperm.slane %v1420_v31, 3 }
 0x2ce   :  { %v672_v42 = vadd.f32 %v671_v54, %v1314_v46 }
 0x2d0   :  { %820 = vrot.lane.b32.xlu0 %v546_v47, %s1038_s21  ;;  %764 = vrot.lane.b32.xlu1 %v625_v38, %s1037_s20 }
 0x2d1   :  { %830 = vrot.lane.b32.xlu2 %v590_v49, %s1038_s21 }
 0x2d8   :  { %826 = vrot.lane.b32.xlu0 %v669_v41, %s1038_s21  ;;  %822 = vrot.lane.b32.xlu1 %v587_v36, %s1038_s21 }
 0x2d9   :  { %885 = vperm.xlu2 %1028, %v881_v51  }
 0x2e0   :  { %832 = vrot.lane.b32.xlu0 %v631_v53, %s1038_s21  ;;  %828 = vrot.lane.b32.xlu1 %v549_v44, %s1038_s21  ;;  %v857_v44 = vperm.slane %v1420_v31, 0  ;;  %v858_v53 = vperm.slane %v1420_v31, 1 }
 0x2e8   :  { %890 = vperm.xlu0 %1029, %v882_v40   ;;  %834 = vrot.lane.b32.xlu1 %v672_v42, %s1038_s21 }
 0x301   :  { %v689_v17 = vpop.permute.xlu2 %688 }
 0x30b   :  { %v755_v61 = vpop.permute.xlu2 %754 }
 0x312   :  { %v685_v56 = vpop.permute.xlu1 %684 }
 0x313   :  { %v1374_v45 = vpop.permute.xlu2 %760 }
 0x31a   :  { %v691_v58 = vpop.permute.xlu0 %690  ;;  %v687_v59 = vpop.permute.xlu1 %686 }
 0x31b   :  { %v1380_v1 = vpop.permute.xlu2 %766  ;;  %v703_v9 = vsel %vm700_vm8, %v689_v17, %v691_v58  ;;  %v717_v12 = vsel %vm700_vm8, %v691_v58, %v685_v56  ;;  %v701_v13 = vsel %vm700_vm8, %v685_v56, %v687_v59  ;;  %v702_v14 = vsel %vm700_vm8, %v687_v59, %v689_v17 }
 0x31c   :  { %v730_v16 = vmul.f32 %v722_v7, %v703_v9  ;;  %v731_v20 = vmul.f32 %v723_v8, %v717_v12  ;;  %v728_v23 = vmul.f32 %v720_v10, %v701_v13  ;;  %v729_v24 = vmul.f32 %v721_v11, %v702_v14 }
 0x31e   :  { %v738_v33 = vadd.f32 %v730_v16, %v1320_v52  ;;  %v739_v41 = vadd.f32 %v731_v20, %v1322_v21  ;;  %v736_v51 = vadd.f32 %v728_v23, %v1316_v48  ;;  %v737_v37 = vadd.f32 %v729_v24, %v1318_v50 }
 0x31f   :  { %v859_v52 = vperm.slane %v1420_v31, 2 }
 0x322   :  { %v1370_v62 = vpop.permute.xlu0 %694  ;;  %v1372_v43 = vpop.permute.xlu1 %692 }
 0x323   :  { %v825_v6 = vpop.permute.xlu2 %824  ;;  %v704_v54 = vsel %vm700_vm8, %v1372_v43, %v1370_v62 }
 0x324   :  { %v732_v12 = vmul.f32 %v720_v10, %v704_v54 }
 0x32a   :  { %v1376_v63 = vpop.permute.xlu0 %698  ;;  %v1378_v0 = vpop.permute.xlu1 %696 }
 0x32b   :  { %v831_v38 = vpop.permute.xlu2 %830  ;;  %v705_v13 = vsel %vm700_vm8, %v1370_v62, %v1378_v0  ;;  %v718_v24 = vsel %vm700_vm8, %v1376_v63, %v1372_v43 }
 0x32c   :  { %v735_v43 = vmul.f32 %v723_v8, %v718_v24 }
 0x332   :  { %v757_v46 = vpop.permute.xlu0 %756  ;;  %v753_v2 = vpop.permute.xlu1 %752 }
 0x333   :  { %v770_v28 = vsel %vm768_vm9, %v755_v61, %v757_v46  ;;  %v769_v29 = vsel %vm768_vm9, %v753_v2, %v755_v61 }
 0x334   :  { %v797_v47 = vmul.f32 %v789_v18, %v770_v28  ;;  %v796_v49 = vmul.f32 %v788_v19, %v769_v29 }
 0x336   :  { %v805_v40 = vadd.f32 %v797_v47, %v737_v37  ;;  %v804_v42 = vadd.f32 %v796_v49, %v736_v51  ;;  %v740_v47 = vadd.f32 %v732_v12, %v1324_v55 }
 0x33a   :  { %v1387_v4 = vpop.permute.xlu0 %762  ;;  %v759_v5 = vpop.permute.xlu1 %758 }
 0x33b   :  { %v771_v30 = vsel %vm768_vm9, %v757_v46, %v759_v5  ;;  %v785_v32 = vsel %vm768_vm9, %v759_v5, %v753_v2  ;;  %v772_v14 = vsel %vm768_vm9, %v1374_v45, %v1387_v4 }
 0x33c   :  { %v798_v34 = vmul.f32 %v790_v25, %v771_v30  ;;  %v799_v36 = vmul.f32 %v791_v35, %v785_v32  ;;  %v733_v30 = vmul.f32 %v721_v11, %v705_v13  ;;  %v800_v32 = vmul.f32 %v788_v19, %v772_v14 }
 0x33d   :  { %v786_v19 = vsel %vm768_vm9, %v1380_v1, %v1374_v45 }
 0x33e   :  { %v806_v21 = vadd.f32 %v798_v34, %v738_v33  ;;  %v807_v56 = vadd.f32 %v799_v36, %v739_v41  ;;  %v706_v34 = vsel %vm700_vm8, %v1378_v0, %v1376_v63  ;;  %v741_v0 = vadd.f32 %v733_v30, %v1326_v22 }
 0x33f   :  { %v743_v41 = vadd.f32 %v735_v43, %v1330_v60  ;;  %v734_v45 = vmul.f32 %v722_v7, %v706_v34  ;;  %v803_v22 = vmul.f32 %v791_v35, %v786_v19 }
 0x342   :  { %v821_v26 = vpop.permute.xlu0 %820  ;;  %v1411_v27 = vpop.permute.xlu1 %764 }
 0x343   :  { %v773_v10 = vsel %vm768_vm9, %v1387_v4, %v1411_v27  ;;  %v774_v36 = vsel %vm768_vm9, %v1411_v27, %v1380_v1  ;;  %v742_v1 = vadd.f32 %v734_v45, %v1328_v57 }
 0x344   :  { %v801_v11 = vmul.f32 %v789_v18, %v773_v10  ;;  %v808_v18 = vadd.f32 %v800_v32, %v740_v47 }
 0x346   :  { %v809_v51 = vadd.f32 %v801_v11, %v741_v0 }
 0x34a   :  { %v827_v48 = vpop.permute.xlu0 %826  ;;  %v823_v17 = vpop.permute.xlu1 %822 }
 0x34b   :  { %v839_v50 = vsel %vm836_vm10, %v825_v6, %v827_v48  ;;  %v853_v58 = vsel %vm836_vm10, %v827_v48, %v821_v26  ;;  %v837_v59 = vsel %vm836_vm10, %v821_v26, %v823_v17  ;;  %v838_v61 = vsel %vm836_vm10, %v823_v17, %v825_v6  ;;  %v886_v26 = vpop.permute.xlu2 %885 }
 0x34c   :  { %v867_v46 = vmul.f32 %v859_v52, %v839_v50  ;;  %v868_v2 = vmul.f32 %v860_v39, %v853_v58  ;;  %v865_v5 = vmul.f32 %v857_v44, %v837_v59  ;;  %v866_v9 = vmul.f32 %v858_v53, %v838_v61 }
 0x34e   :  { %v875_v16 = vadd.f32 %v867_v46, %v806_v21  ;;  %v876_v20 = vadd.f32 %v868_v2, %v807_v56  ;;  %v873_v6 = vadd.f32 %v865_v5, %v804_v42  ;;  %v874_v23 = vadd.f32 %v866_v9, %v805_v40 }
 0x34f   :  { %v811_v40 = vadd.f32 %v803_v22, %v743_v41 }
 0x350   :  { %v1459_v28 = vadd.f32 %v886_v26, %v875_v16  ;;  %v1461_v62 = vadd.f32 %v886_v26, %v876_v20  ;;  %v893_v29 = vadd.f32 %v886_v26, %v873_v6  ;;  %v894_v33 = vadd.f32 %v886_v26, %v874_v23 }
 0x352   :  { %903 = vst [vmem:[%s1551_s11 + $0x10] sm:$0x3f] %v1459_v28  ;;  %v833_v4 = vpop.permute.xlu0 %832  ;;  %v829_v49 = vpop.permute.xlu1 %828  ;;  %v917_v56 = vrot.slane %v894_v33, 6  ;;  %v923_v61 = vrot.slane %v1461_v62, 6 }
 0x353   :  { %904 = vst [vmem:[%s1551_s11 + $0x18] sm:$0x3f] %v1461_v62  ;;  %v841_v55 = vsel %vm836_vm10, %v831_v38, %v833_v4  ;;  %v840_v8 = vsel %vm836_vm10, %v829_v49, %v831_v38 }
 0x354   :  { %901 = vst [vmem:[%s1551_s11] sm:$0x3f] %v893_v29  ;;  %v869_v63 = vmul.f32 %v857_v44, %v840_v8  ;;  %v870_v38 = vmul.f32 %v858_v53, %v841_v55  ;;  %v802_v44 = vmul.f32 %v790_v25, %v774_v36  ;;  %v914_v25 = vrot.slane %v893_v29, 6 }
 0x355   :  { %902 = vst [vmem:[%s1551_s11 + $0x8] sm:$0x3f] %v894_v33 }
 0x356   :  { %v877_v37 = vadd.f32 %v869_v63, %v808_v18  ;;  %v878_v54 = vadd.f32 %v870_v38, %v809_v51  ;;  %v810_v7 = vadd.f32 %v802_v44, %v742_v1 }
 0x35a   :  { %v891_v27 = vpop.permute.xlu0 %890  ;;  %v835_v42 = vpop.permute.xlu1 %834 }
 0x35b   :  { %v897_v53 = vadd.f32 %v891_v27, %v877_v37  ;;  %v898_v21 = vadd.f32 %v891_v27, %v878_v54  ;;  %v842_v60 = vsel %vm836_vm10, %v833_v4, %v835_v42  ;;  %v854_v3 = vsel %vm836_vm10, %v835_v42, %v829_v49 }
 0x35c   :  { %v871_v35 = vmul.f32 %v859_v52, %v842_v60  ;;  %v872_v15 = vmul.f32 %v860_v39, %v854_v3  ;;  %v920_v39 = vrot.slane %v1459_v28, 6 }
 0x35d   :  { %v915_v57 = vrot.slane %v897_v53, 6  ;;  %v918_v48 = vrot.slane %v898_v21, 6 }
 0x35e   :  { %v879_v17 = vadd.f32 %v871_v35, %v810_v7  ;;  %v880_v50 = vadd.f32 %v872_v15, %v811_v40 }
 0x35f   :  { %v916_v58 = vsel %vm913_vm11, %v914_v25, %v915_v57  ;;  %v919_v59 = vsel %vm913_vm11, %v917_v56, %v918_v48  ;;  %938 = vst [vmem:[%s1552_s12 + $0x20] sm:$0x1] %v915_v57 }
 0x360   :  { %934 = vst [vmem:[%s1552_s12] sm:$0xff] %v916_v58  ;;  %v899_v31 = vadd.f32 %v891_v27, %v879_v17  ;;  %v900_v52 = vadd.f32 %v891_v27, %v880_v50 }
 0x361   :  { %935 = vst [vmem:[%s1552_s12 + $0x8] sm:$0xff] %v919_v59 }
 0x362   :  { %939 = vst [vmem:[%s1552_s12 + $0x28] sm:$0x1] %v918_v48  ;;  %v921_v46 = vrot.slane %v899_v31, 6  ;;  %v924_v2 = vrot.slane %v900_v52, 6 }
 0x364   :  { %v922_v5 = vsel %vm913_vm11, %v920_v39, %v921_v46  ;;  %v925_v9 = vsel %vm913_vm11, %v923_v61, %v924_v2  ;;  %940 = vst [vmem:[%s1552_s12 + $0x30] sm:$0x1] %v921_v46 }
 0x365   :  { %936 = vst [vmem:[%s1552_s12 + $0x10] sm:$0xff] %v922_v5 }
 0x366   :  { %937 = vst [vmem:[%s1552_s12 + $0x18] sm:$0xff] %v925_v9 }
 0x367   :  { %941 = vst [vmem:[%s1552_s12 + $0x38] sm:$0x1] %v924_v2 }

// kernel: _lambda_.7
= control target key start
LH: loop header
LB: loop body
LE: loop exit
PB: predicated region body
PF: predicated region fallthrough
CT: control target
= control target key end

     0   :  { %vm35_vm0 = vcmask 1044480   ;;  %v440_v12 = vmov 0   ;;  %vm105_vm4 = vcmask 39936   ;;  %s441_s22 = smov 127   ;;  %s443_s23 = smov 111   ;;  %vm260_vm5 = vcmask 1039360   ;;  %s592_s0 = inlined_call_operand.vmem [shape: f32[5,512], index: 0, kind: input, shape index: {}]   ;;  %s593_s2 = inlined_call_operand.vmem [shape: f32[5,1], index: 2, kind: input, shape index: {}]   ;;  %s594_s3 = inlined_call_operand.vmem [shape: f32[5,1], index: 3, kind: input, shape index: {}]   ;;  %s595_s4 = inlined_call_operand.vmem [shape: f32[32,5], index: 4, kind: input, shape index: {}]   ;;  %s596_s5 = inlined_call_operand.vmem [shape: f32[4,1], index: 5, kind: input, shape index: {}]   ;;  %s597_s1 = inlined_call_operand.vmem [shape: f32[4,512], index: 1, kind: input, shape index: {}]   ;;  %s598_s6 = inlined_call_operand.vmem [shape: f32[1,512], index: 6, kind: input, shape index: {}]   ;;  %s599_s7 = inlined_call_operand.vmem [shape: f32[1,512], index: 7, kind: input, shape index: {}]   ;;  %s600_s8 = inlined_call_operand.vmem [shape: f32[4,512], index: 8, kind: output, shape index: {}]  }
   0x1   :  { %v29_v0 = vld [vmem:[%s592_s0] sm:$0x1f]  ;;  %v30_v1 = vld [vmem:[%s592_s0 + $0x8] sm:$0x1f]  ;;  %v31_v2 = vld [vmem:[%s592_s0 + $0x10] sm:$0x1f]  ;;  %436 = vset.pattern.permute.xlu1 %v440_v12  ;;  %437 = vset.pattern.permute.xlu0 %v440_v12 }
   0x2   :  { %v32_v3 = vld [vmem:[%s592_s0 + $0x18] sm:$0x1f]  ;;  %v36_v4 = vsel %vm35_vm0, %v29_v0, 0.0  ;;  %v37_v5 = vsel %vm35_vm0, %v30_v1, 0.0  ;;  %v39_v6 = vsel %vm35_vm0, %v31_v2, 0.0  ;;  %v101_v59 = vld [vmem:[%s595_s4] sm:$0xff] }
   0x3   :  { %v38_v7 = vadd.f32 %v37_v5, %v36_v4  ;;  %v41_v8 = vsel %vm35_vm0, %v32_v3, 0.0  ;;  %v33_v11 = vld [vmem:[%s593_s2] sm:$0x1f]  ;;  %v102_v60 = vld [vmem:[%s595_s4 + $0x8] sm:$0xff]  ;;  %v103_v61 = vld [vmem:[%s595_s4 + $0x10] sm:$0xff]  ;;  %vm299_vm6 = vcmask 916480  }
   0x4   :  { %81 = vperm.xlu1 %436, %v33_v11   ;;  %v34_v13 = vld [vmem:[%s594_s3] sm:$0x1f]  ;;  %v104_v62 = vld [vmem:[%s595_s4 + $0x18] sm:$0xff]  ;;  %s442_s4 = smov 112   ;;  %vm338_vm7 = vcmask 908288   ;;  %vm401_vm8 = vcmask 1043456  }
   0x5   :  { %v40_v9 = vadd.f32 %v39_v6, %v38_v7  ;;  %v366_v12 = vld [vmem:[%s596_s5] sm:$0xf] }
   0x7   :  { %v42_v10 = vadd.f32 %v41_v8, %v40_v9 }
   0x9   :  { %43 = vadd.xlane.f32.xlu0 %v42_v10 }
   0xc   :  { %90 = vperm.xlu1 %436, %v34_v13  }
  0x76   :  { %v82_v38 = vpop.permute.xlu1 %81 }
  0x7c   :  { %v44_v14 = vpop.xlane.xlu0 %43 }
  0x7d   :  { %v45_v15 = vmul.f32 0.001953125, %v44_v14 }
  0x7e   :  { %v91_v50 = vpop.permute.xlu1 %90 }
  0x7f   :  { %v46_v16 = vsub.f32 %v29_v0, %v45_v15  ;;  %v47_v17 = vsub.f32 %v30_v1, %v45_v15  ;;  %v48_v18 = vsub.f32 %v31_v2, %v45_v15  ;;  %v49_v19 = vsub.f32 %v32_v3, %v45_v15 }
  0x81   :  { %v50_v20 = vmul.f32 %v46_v16, %v46_v16  ;;  %v51_v21 = vmul.f32 %v47_v17, %v47_v17  ;;  %v52_v22 = vmul.f32 %v48_v18, %v48_v18  ;;  %v53_v23 = vmul.f32 %v49_v19, %v49_v19 }
  0x83   :  { %v54_v24 = vsel %vm35_vm0, %v50_v20, 0.0  ;;  %v55_v25 = vsel %vm35_vm0, %v51_v21, 0.0  ;;  %v57_v27 = vsel %vm35_vm0, %v52_v22, 0.0  ;;  %v59_v29 = vsel %vm35_vm0, %v53_v23, 0.0 }
  0x84   :  { %v56_v26 = vadd.f32 %v55_v25, %v54_v24 }
  0x86   :  { %v58_v28 = vadd.f32 %v57_v27, %v56_v26  ;;  %v246_v26 = vld [vmem:[%s598_s6] sm:$0xf] }
  0x87   :  { %v274_v27 = vperm.slane %v246_v26, 3 }
  0x88   :  { %v60_v30 = vadd.f32 %v59_v29, %v58_v28  ;;  %v247_v29 = vld [vmem:[%s599_s7] sm:$0xf] }
  0x8a   :  { %61 = vadd.xlane.f32.xlu0 %v60_v30  ;;  %v271_v30 = vperm.slane %v246_v26, 0 }
  0xfd   :  { %v62_v31 = vpop.xlane.xlu0 %61 }
  0xfe   :  { %v63_v32 = vmul.f32 0.001953125, %v62_v31 }
 0x100   :  { %v64_v33 = vadd.f32 1e-12, %v63_v32 }
 0x102   :  { %438 = vrsqrt.f32 %v64_v33  ;;  %vm71_vm2 = vweird.f32 %v64_v33 }
 0x108   :  { %v439_v34 = vpop.eup %438 }
 0x109   :  { %v66_v35 = vmul.f32 %v439_v34, %v64_v33  ;;  %vm72_vm1 = vweird.f32 %v439_v34 }
 0x10a   :  { %vm73_vm3 = vmor %vm71_vm2, %vm72_vm1 }
 0x10b   :  { %v67_v36 = vmul.f32 %v439_v34, %v66_v35  ;;  %v313_v35 = vperm.slane %v247_v29, 3 }
 0x10d   :  { %v68_v37 = vmul.f32 0.5, %v67_v36 }
 0x10f   :  { %v69_v39 = vsub.f32 1.5, %v68_v37  ;;  %v272_v37 = vperm.slane %v246_v26, 1 }
 0x111   :  { %v70_v40 = vmul.f32 %v439_v34, %v69_v39  ;;  %v310_v39 = vperm.slane %v247_v29, 0 }
 0x113   :  { %v74_v41 = vsel %vm73_vm3, %v439_v34, %v70_v40  ;;  %v348_v34 = vmul.f32 %v247_v29, %v246_v26 }
 0x114   :  { %v75_v42 = vmul.f32 %v74_v41, %v46_v16  ;;  %v76_v43 = vmul.f32 %v74_v41, %v47_v17  ;;  %v77_v44 = vmul.f32 %v74_v41, %v48_v18  ;;  %v78_v45 = vmul.f32 %v74_v41, %v49_v19  ;;  %v376_v18 = vld [vmem:[%s597_s1] sm:$0xff]  ;;  %v377_v19 = vld [vmem:[%s597_s1 + $0x8] sm:$0xff] }
 0x115   :  { %380 = vst [vmem:[#allocation1] ss:$2 sm:$0xff] %v376_v18 }
 0x116   :  { %v84_v46 = vmul.f32 %v82_v38, %v75_v42  ;;  %v85_v47 = vmul.f32 %v82_v38, %v76_v43  ;;  %v86_v48 = vmul.f32 %v82_v38, %v77_v44  ;;  %v87_v49 = vmul.f32 %v82_v38, %v78_v45  ;;  %382 = vst [vmem:[#allocation1 + $0x10] ss:$2 sm:$0xff] %v377_v19 }
 0x117   :  { %v273_v38 = vperm.slane %v246_v26, 2  ;;  %v353_v43 = vperm.slane %v348_v34, 3 }
 0x118   :  { %v93_v51 = vadd.f32 %v91_v50, %v84_v46  ;;  %v94_v52 = vadd.f32 %v91_v50, %v85_v47  ;;  %v95_v53 = vadd.f32 %v91_v50, %v86_v48  ;;  %v96_v54 = vadd.f32 %v91_v50, %v87_v49 }
 0x119   :  { %v311_v49 = vperm.slane %v247_v29, 1  ;;  %v312_v50 = vperm.slane %v247_v29, 2 }
 0x11a   :  { %v97_v55 = vmax.f32 %v93_v51, 0.0  ;;  %v98_v56 = vmax.f32 %v94_v52, 0.0  ;;  %v99_v57 = vmax.f32 %v95_v53, 0.0  ;;  %v100_v58 = vmax.f32 %v96_v54, 0.0 }
 0x11b   :  { %v350_v54 = vperm.slane %v348_v34, 0 }
 0x11c   :  { %412 = vmatpush.msk.msra.mxu0 %vm35_vm0, %v97_v55  ;;  %417 = vmatpush.msk.msra.mxu1 %vm35_vm0, %v98_v56  ;;  %v383_v26 = vld.sshfl [vmem:[#allocation1] sm:$0xff pattern:$0x75316420] }
 0x11d   :  { %422 = vmatpush.msk.msra.mxu2 %vm35_vm0, %v99_v57  ;;  %427 = vmatpush.msk.msra.mxu3 %vm35_vm0, %v100_v58 }
 0x11e   :  { %413 = vmatmul.msk.f32.vlgmr.msra.gmra.mxu0 %vm105_vm4, %v101_v59  ;;  %418 = vmatmul.msk.f32.vlgmr.msra.gmra.mxu1 %vm105_vm4, %v101_v59 }
 0x11f   :  { %423 = vmatmul.msk.f32.vlgmr.msra.gmra.mxu2 %vm105_vm4, %v101_v59  ;;  %428 = vmatmul.msk.f32.vlgmr.msra.gmra.mxu3 %vm105_vm4, %v101_v59 }
 0x126   :  { %414 = vmatmul.msk.f32.gmra.mxu0 %vm105_vm4, %v102_v60  ;;  %419 = vmatmul.msk.f32.gmra.mxu1 %vm105_vm4, %v102_v60 }
 0x127   :  { %424 = vmatmul.msk.f32.gmra.mxu2 %vm105_vm4, %v102_v60  ;;  %429 = vmatmul.msk.f32.gmra.mxu3 %vm105_vm4, %v102_v60 }
 0x12e   :  { %420 = vmatmul.msk.f32.gmra.mxu1 %vm105_vm4, %v103_v61  ;;  %415 = vmatmul.msk.f32.gmra.mxu0 %vm105_vm4, %v103_v61 }
 0x12f   :  { %425 = vmatmul.msk.f32.gmra.mxu2 %vm105_vm4, %v103_v61  ;;  %430 = vmatmul.msk.f32.gmra.mxu3 %vm105_vm4, %v103_v61 }
 0x136   :  { %421 = vmatmul.msk.f32.gmra.mxu1 %vm105_vm4, %v104_v62  ;;  %416 = vmatmul.msk.f32.gmra.mxu0 %vm105_vm4, %v104_v62 }
 0x137   :  { %426 = vmatmul.msk.f32.gmra.mxu2 %vm105_vm4, %v104_v62  ;;  %431 = vmatmul.msk.f32.gmra.mxu3 %vm105_vm4, %v104_v62  ;;  %v351_v62 = vperm.slane %v348_v34, 1 }
 0x19b   :  { %v547_v63 = vpop.f32.mrf.mxu0  ;;  %v549_v0 = vpop.f32.mrf.mxu1 }
 0x1a2   :  { %v551_v1 = vpop.f32.mrf.mxu2  ;;  %v553_v2 = vpop.f32.mrf.mxu3 }
 0x1a3   :  { %v150_v3 = vpop.f32.mrf.mxu0  ;;  %v179_v4 = vpop.f32.mrf.mxu1 }
 0x1a4   :  { %252 = vrot.lane.b32.xlu2 %v150_v3, %s441_s22 }
 0x1aa   :  { %v208_v5 = vpop.f32.mrf.mxu2  ;;  %v237_v6 = vpop.f32.mrf.mxu3 }
 0x1ab   :  { %258 = vrot.lane.b32.xlu1 %v237_v6, %s441_s22  ;;  %256 = vrot.lane.b32.xlu0 %v208_v5, %s441_s22  ;;  %v182_v7 = vpop.f32.mrf.mxu1  ;;  %v153_v8 = vpop.f32.mrf.mxu0  ;;  %v352_v5 = vperm.slane %v348_v34, 2 }
 0x1ac   :  { %254 = vrot.lane.b32.xlu2 %v179_v4, %s441_s22 }
 0x1b2   :  { %v211_v10 = vpop.f32.mrf.mxu2  ;;  %v240_v11 = vpop.f32.mrf.mxu3 }
 0x1b3   :  { %293 = vrot.lane.b32.xlu1 %v182_v7, %s442_s4  ;;  %v185_v9 = vpop.f32.mrf.mxu1  ;;  %v156_v14 = vpop.f32.mrf.mxu0 }
 0x1b4   :  { %332 = vrot.lane.b32.xlu0 %v185_v9, %s443_s23  ;;  %291 = vrot.lane.b32.xlu2 %v153_v8, %s442_s4 }
 0x1ba   :  { %v214_v13 = vpop.f32.mrf.mxu2  ;;  %v243_v15 = vpop.f32.mrf.mxu3 }
 0x1bb   :  { %297 = vrot.lane.b32.xlu1 %v240_v11, %s442_s4 }
 0x1bc   :  { %369 = vperm.xlu0 %437, %v366_v12   ;;  %295 = vrot.lane.b32.xlu2 %v211_v10, %s442_s4 }
 0x1c3   :  { %334 = vrot.lane.b32.xlu1 %v214_v13, %s443_s23  ;;  %v386_v13 = vld.sshfl [vmem:[#allocation1 + $0x18] sm:$0xff pattern:$0x75316420] }
 0x1c4   :  { %330 = vrot.lane.b32.xlu2 %v156_v14, %s443_s23 }
 0x1cc   :  { %336 = vrot.lane.b32.xlu2 %v243_v15, %s443_s23 }
 0x1fe   :  { %v253_v16 = vpop.permute.xlu2 %252 }
 0x206   :  { %v255_v17 = vpop.permute.xlu2 %254 }
 0x207   :  { %v261_v31 = vsel %vm260_vm5, %v253_v16, %v255_v17 }
 0x208   :  { %v279_v40 = vmul.f32 %v271_v30, %v261_v31 }
 0x20a   :  { %v283_v60 = vadd.f32 %v279_v40, %v547_v63 }
 0x20e   :  { %v292_v20 = vpop.permute.xlu2 %291 }
 0x216   :  { %v296_v21 = vpop.permute.xlu2 %295 }
 0x21d   :  { %v259_v22 = vpop.permute.xlu1 %258  ;;  %v257_v24 = vpop.permute.xlu0 %256 }
 0x21e   :  { %v331_v23 = vpop.permute.xlu2 %330  ;;  %v269_v28 = vsel %vm260_vm5, %v259_v22, %v253_v16  ;;  %v262_v41 = vsel %vm260_vm5, %v255_v17, %v257_v24  ;;  %v263_v44 = vsel %vm260_vm5, %v257_v24, %v259_v22  ;;  %v384_v22 = vld.sshfl [vmem:[#allocation1 + $0x8] sm:$0xff pattern:$0x75316420] }
 0x21f   :  { %v282_v33 = vmul.f32 %v274_v27, %v269_v28  ;;  %v280_v52 = vmul.f32 %v272_v37, %v262_v41  ;;  %v281_v56 = vmul.f32 %v273_v38, %v263_v44 }
 0x221   :  { %v286_v48 = vadd.f32 %v282_v33, %v553_v2  ;;  %v284_v6 = vadd.f32 %v280_v52, %v549_v0  ;;  %v285_v8 = vadd.f32 %v281_v56, %v551_v1 }
 0x225   :  { %v294_v25 = vpop.permute.xlu1 %293 }
 0x226   :  { %v333_v32 = vpop.permute.xlu0 %332  ;;  %v337_v36 = vpop.permute.xlu2 %336  ;;  %v300_v45 = vsel %vm299_vm6, %v292_v20, %v294_v25  ;;  %v301_v53 = vsel %vm299_vm6, %v294_v25, %v296_v21 }
 0x227   :  { %v347_v47 = vsel %vm338_vm7, %v337_v36, %v331_v23  ;;  %v318_v57 = vmul.f32 %v310_v39, %v300_v45  ;;  %v339_v61 = vsel %vm338_vm7, %v331_v23, %v333_v32  ;;  %v319_v3 = vmul.f32 %v311_v49, %v301_v53  ;;  %v385_v23 = vld.sshfl [vmem:[#allocation1 + $0x10] sm:$0xff pattern:$0x75316420] }
 0x228   :  { %v361_v59 = vmul.f32 %v353_v43, %v347_v47  ;;  %v358_v10 = vmul.f32 %v350_v54, %v339_v61 }
 0x229   :  { %v322_v9 = vadd.f32 %v318_v57, %v283_v60  ;;  %v323_v15 = vadd.f32 %v319_v3, %v284_v6 }
 0x22b   :  { %v362_v19 = vadd.f32 %v358_v10, %v322_v9 }
 0x22d   :  { %v298_v42 = vpop.permute.xlu1 %297 }
 0x22e   :  { %v308_v46 = vsel %vm299_vm6, %v298_v42, %v292_v20  ;;  %v302_v55 = vsel %vm299_vm6, %v296_v21, %v298_v42  ;;  %v370_v7 = vpop.permute.xlu0 %369 }
 0x22f   :  { %v321_v51 = vmul.f32 %v313_v35, %v308_v46  ;;  %v320_v2 = vmul.f32 %v312_v50, %v302_v55  ;;  %v372_v1 = vadd.f32 %v370_v7, %v362_v19 }
 0x231   :  { %v325_v58 = vadd.f32 %v321_v51, %v286_v48  ;;  %v324_v16 = vadd.f32 %v320_v2, %v285_v8  ;;  %v391_v30 = vadd.f32 %v383_v26, %v372_v1 }
 0x233   :  { %v365_v4 = vadd.f32 %v361_v59, %v325_v58 }
 0x235   :  { %v375_v11 = vadd.f32 %v370_v7, %v365_v4  ;;  %v335_v12 = vpop.permute.xlu1 %334 }
 0x236   :  { %v340_v14 = vsel %vm338_vm7, %v333_v32, %v335_v12  ;;  %v341_v63 = vsel %vm338_vm7, %v335_v12, %v337_v36 }
 0x237   :  { %v359_v17 = vmul.f32 %v351_v62, %v340_v14  ;;  %v360_v18 = vmul.f32 %v352_v5, %v341_v63  ;;  %v394_v20 = vadd.f32 %v386_v13, %v375_v11 }
 0x239   :  { %v363_v21 = vadd.f32 %v359_v17, %v323_v15  ;;  %v364_v0 = vadd.f32 %v360_v18, %v324_v16  ;;  %v400_v27 = vrot.slane %v394_v20, 4 }
 0x23b   :  { %v373_v24 = vadd.f32 %v370_v7, %v363_v21  ;;  %v374_v25 = vadd.f32 %v370_v7, %v364_v0 }
 0x23d   :  { %v392_v28 = vadd.f32 %v384_v22, %v373_v24  ;;  %v393_v29 = vadd.f32 %v385_v23, %v374_v25 }
 0x23f   :  { %v399_v31 = vrot.slane %v392_v28, 4  ;;  %v403_v32 = vsel %vm401_vm8, %v393_v29, %v400_v27 }
 0x240   :  { %407 = vst [vmem:[%s600_s8 + $0x8] sm:$0xff] %v403_v32 }
 0x241   :  { %v402_v33 = vsel %vm401_vm8, %v391_v30, %v399_v31 }
 0x242   :  { %406 = vst [vmem:[%s600_s8] sm:$0xff] %v402_v33 }

// kernel: _lambda_.6
= control target key start
LH: loop header
LB: loop body
LE: loop exit
PB: predicated region body
PF: predicated region fallthrough
CT: control target
= control target key end

     0   :  { %vm37_vm0 = vcmask 1045504   ;;  %v652_v12 = vmov 0   ;;  %vm111_vm4 = vcmask 48128   ;;  %s654_s13 = smov 112   ;;  %s655_s14 = smov 111   ;;  %vm338_vm5 = vcmask 1039360   ;;  %s990_s0 = inlined_call_operand.vmem [shape: f32[6,512], index: 0, kind: input, shape index: {}]   ;;  %s991_s2 = inlined_call_operand.vmem [shape: f32[6,1], index: 2, kind: input, shape index: {}]   ;;  %s992_s3 = inlined_call_operand.vmem [shape: f32[6,1], index: 3, kind: input, shape index: {}]   ;;  %s993_s4 = inlined_call_operand.vmem [shape: f32[64,6], index: 4, kind: input, shape index: {}]   ;;  %s994_s5 = inlined_call_operand.vmem [shape: f32[9,1], index: 5, kind: input, shape index: {}]   ;;  %s995_s6 = inlined_call_operand.vmem [shape: f32[1,512], index: 6, kind: input, shape index: {}]   ;;  %s996_s7 = inlined_call_operand.vmem [shape: f32[1,512], index: 7, kind: input, shape index: {}]   ;;  %s997_s1 = inlined_call_operand.vmem [shape: f32[9,512], index: 1, kind: input, shape index: {}]   ;;  %s998_s8 = inlined_call_operand.vmem [shape: f32[5,512], index: 8, kind: output, shape index: {0}]   ;;  %s999_s9 = inlined_call_operand.vmem [shape: f32[4,512], index: 9, kind: output, shape index: {1}]  }
   0x1   :  { %v31_v0 = vld [vmem:[%s990_s0] sm:$0x3f]  ;;  %v32_v1 = vld [vmem:[%s990_s0 + $0x8] sm:$0x3f]  ;;  %v33_v2 = vld [vmem:[%s990_s0 + $0x10] sm:$0x3f]  ;;  %648 = vset.pattern.permute.xlu1 %v652_v12  ;;  %649 = vset.pattern.permute.xlu0 %v652_v12 }
   0x2   :  { %v34_v3 = vld [vmem:[%s990_s0 + $0x18] sm:$0x3f]  ;;  %v38_v4 = vsel %vm37_vm0, %v31_v0, 0.0  ;;  %v39_v5 = vsel %vm37_vm0, %v32_v1, 0.0  ;;  %v41_v6 = vsel %vm37_vm0, %v33_v2, 0.0  ;;  %v103_v59 = vld [vmem:[%s993_s4] sm:$0xff] }
   0x3   :  { %v40_v7 = vadd.f32 %v39_v5, %v38_v4  ;;  %v43_v8 = vsel %vm37_vm0, %v34_v3, 0.0  ;;  %v35_v11 = vld [vmem:[%s991_s2] sm:$0x3f]  ;;  %v104_v60 = vld [vmem:[%s993_s4 + $0x8] sm:$0xff]  ;;  %v105_v61 = vld [vmem:[%s993_s4 + $0x10] sm:$0xff]  ;;  %vm406_vm6 = vcmask 916480  }
   0x4   :  { %83 = vperm.xlu1 %648, %v35_v11   ;;  %v36_v13 = vld [vmem:[%s992_s3] sm:$0x3f]  ;;  %v106_v62 = vld [vmem:[%s993_s4 + $0x18] sm:$0xff]  ;;  %vm474_vm7 = vcmask 908288   ;;  %vm583_vm8 = vcmask 1042432   ;;  %vm584_vm9 = vcmask 1046532  }
   0x5   :  { %v42_v9 = vadd.f32 %v41_v6, %v40_v7  ;;  %v107_v63 = vld [vmem:[%s993_s4 + $0x20] sm:$0xff]  ;;  %vm585_vm10 = vmor %vm583_vm8, %vm584_vm9 }
   0x7   :  { %v44_v10 = vadd.f32 %v43_v8, %v42_v9 }
   0x9   :  { %45 = vadd.xlane.f32.xlu0 %v44_v10 }
   0xc   :  { %92 = vperm.xlu1 %648, %v36_v13  }
  0x76   :  { %v84_v38 = vpop.permute.xlu1 %83 }
  0x7c   :  { %v46_v14 = vpop.xlane.xlu0 %45 }
  0x7d   :  { %v47_v15 = vmul.f32 0.001953125, %v46_v14 }
  0x7e   :  { %v93_v50 = vpop.permute.xlu1 %92 }
  0x7f   :  { %v48_v16 = vsub.f32 %v31_v0, %v47_v15  ;;  %v49_v17 = vsub.f32 %v32_v1, %v47_v15  ;;  %v50_v18 = vsub.f32 %v33_v2, %v47_v15  ;;  %v51_v19 = vsub.f32 %v34_v3, %v47_v15  ;;  %v108_v0 = vld [vmem:[%s993_s4 + $0x28] sm:$0xff]  ;;  %v109_v1 = vld [vmem:[%s993_s4 + $0x30] sm:$0xff]  ;;  %v110_v2 = vld [vmem:[%s993_s4 + $0x38] sm:$0xff]  ;;  %s653_s4 = smov 127  }
  0x81   :  { %v52_v20 = vmul.f32 %v48_v16, %v48_v16  ;;  %v53_v21 = vmul.f32 %v49_v17, %v49_v17  ;;  %v54_v22 = vmul.f32 %v50_v18, %v50_v18  ;;  %v55_v23 = vmul.f32 %v51_v19, %v51_v19 }
  0x83   :  { %v56_v24 = vsel %vm37_vm0, %v52_v20, 0.0  ;;  %v57_v25 = vsel %vm37_vm0, %v53_v21, 0.0  ;;  %v59_v27 = vsel %vm37_vm0, %v54_v22, 0.0  ;;  %v61_v29 = vsel %vm37_vm0, %v55_v23, 0.0 }
  0x84   :  { %v58_v26 = vadd.f32 %v57_v25, %v56_v24 }
  0x86   :  { %v60_v28 = vadd.f32 %v59_v27, %v58_v26 }
  0x88   :  { %v62_v30 = vadd.f32 %v61_v29, %v60_v28 }
  0x8a   :  { %63 = vadd.xlane.f32.xlu0 %v62_v30 }
  0xfd   :  { %v64_v31 = vpop.xlane.xlu0 %63 }
  0xfe   :  { %v65_v32 = vmul.f32 0.001953125, %v64_v31 }
 0x100   :  { %v66_v33 = vadd.f32 1e-12, %v65_v32  ;;  %v519_v32 = vld [vmem:[%s994_s5] sm:$0xff] }
 0x102   :  { %650 = vrsqrt.f32 %v66_v33  ;;  %vm73_vm2 = vweird.f32 %v66_v33 }
 0x108   :  { %v651_v34 = vpop.eup %650 }
 0x109   :  { %v68_v35 = vmul.f32 %v651_v34, %v66_v33  ;;  %vm74_vm1 = vweird.f32 %v651_v34 }
 0x10a   :  { %vm75_vm3 = vmor %vm73_vm2, %vm74_vm1 }
 0x10b   :  { %v69_v36 = vmul.f32 %v651_v34, %v68_v35  ;;  %v520_v35 = vld [vmem:[%s994_s5 + $0x8] sm:$0x1] }
 0x10d   :  { %v70_v37 = vmul.f32 0.5, %v69_v36 }
 0x10f   :  { %v71_v39 = vsub.f32 1.5, %v70_v37 }
 0x111   :  { %v72_v40 = vmul.f32 %v651_v34, %v71_v39 }
 0x113   :  { %v76_v41 = vsel %vm75_vm3, %v651_v34, %v72_v40 }
 0x114   :  { %v77_v42 = vmul.f32 %v76_v41, %v48_v16  ;;  %v78_v43 = vmul.f32 %v76_v41, %v49_v17  ;;  %v79_v44 = vmul.f32 %v76_v41, %v50_v18  ;;  %v80_v45 = vmul.f32 %v76_v41, %v51_v19 }
 0x116   :  { %v86_v46 = vmul.f32 %v84_v38, %v77_v42  ;;  %v87_v47 = vmul.f32 %v84_v38, %v78_v43  ;;  %v88_v48 = vmul.f32 %v84_v38, %v79_v44  ;;  %v89_v49 = vmul.f32 %v84_v38, %v80_v45 }
 0x118   :  { %v95_v51 = vadd.f32 %v93_v50, %v86_v46  ;;  %v96_v52 = vadd.f32 %v93_v50, %v87_v47  ;;  %v97_v53 = vadd.f32 %v93_v50, %v88_v48  ;;  %v98_v54 = vadd.f32 %v93_v50, %v89_v49 }
 0x11a   :  { %v99_v55 = vmax.f32 %v95_v51, 0.0  ;;  %v100_v56 = vmax.f32 %v96_v52, 0.0  ;;  %v101_v57 = vmax.f32 %v97_v53, 0.0  ;;  %v102_v58 = vmax.f32 %v98_v54, 0.0  ;;  %v831_v52 = vld [vmem:[%s995_s6] sm:$0xf] }
 0x11c   :  { %606 = vmatpush.msk.msra.mxu0 %vm37_vm0, %v99_v55  ;;  %615 = vmatpush.msk.msra.mxu1 %vm37_vm0, %v100_v56  ;;  %v358_v56 = vperm.slane %v831_v52, 0 }
 0x11d   :  { %624 = vmatpush.msk.msra.mxu2 %vm37_vm0, %v101_v57  ;;  %633 = vmatpush.msk.msra.mxu3 %vm37_vm0, %v102_v58  ;;  %v839_v57 = vld [vmem:[%s996_s7] sm:$0xf] }
 0x11e   :  { %607 = vmatmul.msk.f32.vlgmr.msra.gmra.mxu0 %vm111_vm4, %v103_v59  ;;  %616 = vmatmul.msk.f32.vlgmr.msra.gmra.mxu1 %vm111_vm4, %v103_v59 }
 0x11f   :  { %625 = vmatmul.msk.f32.vlgmr.msra.gmra.mxu2 %vm111_vm4, %v103_v59  ;;  %634 = vmatmul.msk.f32.vlgmr.msra.gmra.mxu3 %vm111_vm4, %v103_v59  ;;  %v359_v59 = vperm.slane %v831_v52, 1 }
 0x126   :  { %608 = vmatmul.msk.f32.gmra.mxu0 %vm111_vm4, %v104_v60  ;;  %617 = vmatmul.msk.f32.gmra.mxu1 %vm111_vm4, %v104_v60 }
 0x127   :  { %626 = vmatmul.msk.f32.gmra.mxu2 %vm111_vm4, %v104_v60  ;;  %635 = vmatmul.msk.f32.gmra.mxu3 %vm111_vm4, %v104_v60  ;;  %v845_v60 = vmul.f32 %v839_v57, %v831_v52 }
 0x12e   :  { %609 = vmatmul.msk.f32.gmra.mxu0 %vm111_vm4, %v105_v61  ;;  %618 = vmatmul.msk.f32.gmra.mxu1 %vm111_vm4, %v105_v61 }
 0x12f   :  { %627 = vmatmul.msk.f32.gmra.mxu2 %vm111_vm4, %v105_v61  ;;  %636 = vmatmul.msk.f32.gmra.mxu3 %vm111_vm4, %v105_v61  ;;  %v361_v61 = vperm.slane %v831_v52, 3 }
 0x136   :  { %610 = vmatmul.msk.f32.gmra.mxu0 %vm111_vm4, %v106_v62  ;;  %619 = vmatmul.msk.f32.gmra.mxu1 %vm111_vm4, %v106_v62 }
 0x137   :  { %628 = vmatmul.msk.f32.gmra.mxu2 %vm111_vm4, %v106_v62  ;;  %637 = vmatmul.msk.f32.gmra.mxu3 %vm111_vm4, %v106_v62 }
 0x13e   :  { %611 = vmatmul.msk.f32.gmra.mxu0 %vm111_vm4, %v107_v63  ;;  %620 = vmatmul.msk.f32.gmra.mxu1 %vm111_vm4, %v107_v63 }
 0x13f   :  { %629 = vmatmul.msk.f32.gmra.mxu2 %vm111_vm4, %v107_v63  ;;  %638 = vmatmul.msk.f32.gmra.mxu3 %vm111_vm4, %v107_v63  ;;  %v360_v63 = vperm.slane %v831_v52, 2 }
 0x146   :  { %612 = vmatmul.msk.f32.gmra.mxu0 %vm111_vm4, %v108_v0  ;;  %621 = vmatmul.msk.f32.gmra.mxu1 %vm111_vm4, %v108_v0 }
 0x147   :  { %630 = vmatmul.msk.f32.gmra.mxu2 %vm111_vm4, %v108_v0  ;;  %639 = vmatmul.msk.f32.gmra.mxu3 %vm111_vm4, %v108_v0  ;;  %v426_v0 = vperm.slane %v839_v57, 0 }
 0x14e   :  { %622 = vmatmul.msk.f32.gmra.mxu1 %vm111_vm4, %v109_v1  ;;  %613 = vmatmul.msk.f32.gmra.mxu0 %vm111_vm4, %v109_v1 }
 0x14f   :  { %631 = vmatmul.msk.f32.gmra.mxu2 %vm111_vm4, %v109_v1  ;;  %640 = vmatmul.msk.f32.gmra.mxu3 %vm111_vm4, %v109_v1  ;;  %v427_v1 = vperm.slane %v839_v57, 1 }
 0x156   :  { %623 = vmatmul.msk.f32.gmra.mxu1 %vm111_vm4, %v110_v2  ;;  %614 = vmatmul.msk.f32.gmra.mxu0 %vm111_vm4, %v110_v2 }
 0x157   :  { %632 = vmatmul.msk.f32.gmra.mxu2 %vm111_vm4, %v110_v2  ;;  %641 = vmatmul.msk.f32.gmra.mxu3 %vm111_vm4, %v110_v2 }
 0x19b   :  { %v792_v3 = vpop.f32.mrf.mxu0  ;;  %v794_v4 = vpop.f32.mrf.mxu1 }
 0x1a2   :  { %v796_v5 = vpop.f32.mrf.mxu2  ;;  %v798_v6 = vpop.f32.mrf.mxu3 }
 0x1a3   :  { %v800_v7 = vpop.f32.mrf.mxu0  ;;  %v802_v8 = vpop.f32.mrf.mxu1 }
 0x1aa   :  { %v804_v9 = vpop.f32.mrf.mxu2  ;;  %v806_v10 = vpop.f32.mrf.mxu3 }
 0x1ab   :  { %v171_v11 = vpop.f32.mrf.mxu0  ;;  %v212_v12 = vpop.f32.mrf.mxu1 }
 0x1ac   :  { %322 = vrot.lane.b32.xlu2 %v171_v11, %s653_s4 }
 0x1b2   :  { %v253_v13 = vpop.f32.mrf.mxu2  ;;  %v294_v14 = vpop.f32.mrf.mxu3 }
 0x1b3   :  { %328 = vrot.lane.b32.xlu1 %v294_v14, %s653_s4  ;;  %326 = vrot.lane.b32.xlu0 %v253_v13, %s653_s4  ;;  %v174_v15 = vpop.f32.mrf.mxu0  ;;  %v215_v16 = vpop.f32.mrf.mxu1 }
 0x1b4   :  { %324 = vrot.lane.b32.xlu2 %v212_v12, %s653_s4 }
 0x1ba   :  { %v256_v17 = vpop.f32.mrf.mxu2  ;;  %v297_v18 = vpop.f32.mrf.mxu3 }
 0x1bb   :  { %332 = vrot.lane.b32.xlu1 %v215_v16, %s653_s4  ;;  %v177_v19 = vpop.f32.mrf.mxu0  ;;  %v218_v20 = vpop.f32.mrf.mxu1  ;;  %v496_v16 = vperm.slane %v845_v60, 1 }
 0x1bc   :  { %392 = vrot.lane.b32.xlu0 %v218_v20, %s654_s13  ;;  %330 = vrot.lane.b32.xlu2 %v174_v15, %s653_s4  ;;  %v428_v20 = vperm.slane %v839_v57, 2 }
 0x1c2   :  { %v259_v21 = vpop.f32.mrf.mxu2  ;;  %v300_v22 = vpop.f32.mrf.mxu3 }
 0x1c3   :  { %336 = vrot.lane.b32.xlu1 %v297_v18, %s653_s4  ;;  %v180_v23 = vpop.f32.mrf.mxu0  ;;  %v221_v24 = vpop.f32.mrf.mxu1 }
 0x1c4   :  { %334 = vrot.lane.b32.xlu2 %v256_v17, %s653_s4  ;;  %398 = vrot.lane.b32.xlu0 %v180_v23, %s654_s13  ;;  %v495_v17 = vperm.slane %v845_v60, 0 }
 0x1ca   :  { %v262_v25 = vpop.f32.mrf.mxu2  ;;  %v303_v26 = vpop.f32.mrf.mxu3 }
 0x1cb   :  { %394 = vrot.lane.b32.xlu1 %v259_v21, %s654_s13  ;;  %v224_v27 = vpop.f32.mrf.mxu1  ;;  %v183_v29 = vpop.f32.mrf.mxu0 }
 0x1cc   :  { %390 = vrot.lane.b32.xlu2 %v177_v19, %s654_s13  ;;  %404 = vrot.lane.b32.xlu0 %v303_v26, %s654_s13  ;;  %v429_v19 = vperm.slane %v839_v57, 3 }
 0x1d2   :  { %v265_v28 = vpop.f32.mrf.mxu2  ;;  %v306_v31 = vpop.f32.mrf.mxu3 }
 0x1d3   :  { %400 = vrot.lane.b32.xlu1 %v221_v24, %s654_s13  ;;  %v227_v30 = vpop.f32.mrf.mxu1  ;;  %v186_v34 = vpop.f32.mrf.mxu0 }
 0x1d4   :  { %396 = vrot.lane.b32.xlu2 %v300_v22, %s654_s13  ;;  %462 = vrot.lane.b32.xlu0 %v265_v28, %s655_s14 }
 0x1da   :  { %v268_v33 = vpop.f32.mrf.mxu2  ;;  %v309_v36 = vpop.f32.mrf.mxu3 }
 0x1db   :  { %458 = vrot.lane.b32.xlu1 %v183_v29, %s655_s14 }
 0x1dc   :  { %402 = vrot.lane.b32.xlu2 %v262_v25, %s654_s13  ;;  %468 = vrot.lane.b32.xlu0 %v227_v30, %s655_s14 }
 0x1e3   :  { %464 = vrot.lane.b32.xlu1 %v306_v31, %s655_s14 }
 0x1e4   :  { %460 = vrot.lane.b32.xlu2 %v224_v27, %s655_s14  ;;  %523 = vperm.xlu0 %649, %v519_v32  }
 0x1eb   :  { %470 = vrot.lane.b32.xlu1 %v268_v33, %s655_s14 }
 0x1ec   :  { %466 = vrot.lane.b32.xlu2 %v186_v34, %s655_s14 }
 0x1f3   :  { %528 = vperm.xlu1 %648, %v520_v35  }
 0x1f4   :  { %472 = vrot.lane.b32.xlu2 %v309_v36, %s655_s14 }
 0x206   :  { %v323_v37 = vpop.permute.xlu2 %322 }
 0x20e   :  { %v325_v38 = vpop.permute.xlu2 %324 }
 0x20f   :  { %v339_v58 = vsel %vm338_vm5, %v323_v37, %v325_v38 }
 0x210   :  { %v366_v2 = vmul.f32 %v358_v56, %v339_v58 }
 0x212   :  { %v374_v30 = vadd.f32 %v366_v2, %v792_v3 }
 0x216   :  { %v814_v39 = vpop.permute.xlu2 %330 }
 0x21e   :  { %v816_v40 = vpop.permute.xlu2 %334 }
 0x225   :  { %v329_v41 = vpop.permute.xlu1 %328  ;;  %v327_v42 = vpop.permute.xlu0 %326 }
 0x226   :  { %v391_v43 = vpop.permute.xlu2 %390  ;;  %v340_v62 = vsel %vm338_vm5, %v325_v38, %v327_v42  ;;  %v355_v11 = vsel %vm338_vm5, %v329_v41, %v323_v37  ;;  %v341_v14 = vsel %vm338_vm5, %v327_v42, %v329_v41  ;;  %v497_v41 = vperm.slane %v845_v60, 2 }
 0x227   :  { %v367_v15 = vmul.f32 %v359_v59, %v340_v62  ;;  %v369_v28 = vmul.f32 %v361_v61, %v355_v11  ;;  %v368_v29 = vmul.f32 %v360_v63, %v341_v14 }
 0x229   :  { %v375_v31 = vadd.f32 %v367_v15, %v794_v4  ;;  %v377_v42 = vadd.f32 %v369_v28, %v798_v6  ;;  %v376_v3 = vadd.f32 %v368_v29, %v796_v5  ;;  %v539_v6 = vld [vmem:[%s997_s1] sm:$0xff]  ;;  %v540_v5 = vld [vmem:[%s997_s1 + $0x8] sm:$0xff] }
 0x22d   :  { %v818_v44 = vpop.permute.xlu1 %332 }
 0x22e   :  { %v393_v45 = vpop.permute.xlu0 %392  ;;  %v397_v46 = vpop.permute.xlu2 %396  ;;  %v342_v4 = vsel %vm338_vm5, %v814_v39, %v818_v44 }
 0x22f   :  { %v407_v12 = vsel %vm406_vm6, %v391_v43, %v393_v45  ;;  %v423_v25 = vsel %vm406_vm6, %v397_v46, %v391_v43  ;;  %v370_v28 = vmul.f32 %v358_v56, %v342_v4 }
 0x230   :  { %v434_v24 = vmul.f32 %v426_v0, %v407_v12  ;;  %v437_v35 = vmul.f32 %v429_v19, %v423_v25 }
 0x232   :  { %v442_v37 = vadd.f32 %v434_v24, %v374_v30 }
 0x235   :  { %v820_v47 = vpop.permute.xlu1 %336 }
 0x236   :  { %v822_v48 = vpop.permute.xlu0 %398  ;;  %v824_v49 = vpop.permute.xlu2 %402 }
 0x23d   :  { %v395_v50 = vpop.permute.xlu1 %394 }
 0x23e   :  { %v826_v51 = vpop.permute.xlu0 %404  ;;  %v461_v55 = vpop.permute.xlu2 %460  ;;  %v408_v13 = vsel %vm406_vm6, %v393_v45, %v395_v50  ;;  %v409_v26 = vsel %vm406_vm6, %v395_v50, %v397_v46  ;;  %v498_v46 = vperm.slane %v845_v60, 3  ;;  %v544_v60 = vld [vmem:[%s997_s1 + $0x28] sm:$0x1] }
 0x23f   :  { %v435_v27 = vmul.f32 %v427_v1, %v408_v13  ;;  %v436_v36 = vmul.f32 %v428_v20, %v409_v26 }
 0x241   :  { %v443_v38 = vadd.f32 %v435_v27, %v375_v31  ;;  %v444_v58 = vadd.f32 %v436_v36, %v376_v3 }
 0x245   :  { %v833_v53 = vpop.permute.xlu1 %400 }
 0x246   :  { %v463_v54 = vpop.permute.xlu0 %462  ;;  %v467_v33 = vpop.permute.xlu2 %466  ;;  %v411_v29 = vsel %vm406_vm6, %v833_v53, %v824_v49 }
 0x247   :  { %v476_v21 = vsel %vm474_vm7, %v461_v55, %v463_v54 }
 0x248   :  { %v504_v32 = vmul.f32 %v496_v16, %v476_v21  ;;  %v356_v21 = vsel %vm338_vm5, %v820_v47, %v814_v39  ;;  %v542_v39 = vld [vmem:[%s997_s1 + $0x18] sm:$0xff] }
 0x24a   :  { %v512_v43 = vadd.f32 %v504_v32, %v443_v38 }
 0x24d   :  { %v459_v18 = vpop.permute.xlu1 %458 }
 0x24e   :  { %v475_v22 = vsel %vm474_vm7, %v459_v18, %v461_v55  ;;  %v866_v23 = vpop.permute.xlu0 %468  ;;  %v445_v55 = vadd.f32 %v437_v35, %v377_v42  ;;  %v473_v56 = vpop.permute.xlu2 %472 }
 0x24f   :  { %v503_v34 = vmul.f32 %v495_v17, %v475_v22  ;;  %v412_v22 = vsel %vm406_vm6, %v824_v49, %v826_v51 }
 0x250   :  { %v440_v35 = vmul.f32 %v428_v20, %v412_v22 }
 0x251   :  { %v511_v45 = vadd.f32 %v503_v34, %v442_v37  ;;  %v373_v34 = vmul.f32 %v361_v61, %v356_v21  ;;  %v439_v61 = vmul.f32 %v427_v1, %v411_v29 }
 0x253   :  { %v381_v57 = vadd.f32 %v373_v34, %v806_v10  ;;  %v545_v10 = vld [vmem:[%s997_s1 + $0x30] sm:$0x1] }
 0x255   :  { %v465_v50 = vpop.permute.xlu1 %464 }
 0x256   :  { %v477_v62 = vsel %vm474_vm7, %v463_v54, %v465_v50  ;;  %v491_v2 = vsel %vm474_vm7, %v465_v50, %v459_v18  ;;  %v524_v11 = vpop.permute.xlu0 %523  ;;  %v343_v54 = vsel %vm338_vm5, %v818_v44, %v816_v40  ;;  %v344_v18 = vsel %vm338_vm5, %v816_v40, %v820_v47  ;;  %v541_v40 = vld [vmem:[%s997_s1 + $0x10] sm:$0xff] }
 0x257   :  { %v505_v12 = vmul.f32 %v497_v41, %v477_v62  ;;  %v506_v13 = vmul.f32 %v498_v46, %v491_v2  ;;  %v531_v14 = vadd.f32 %v524_v11, %v511_v45  ;;  %v532_v15 = vadd.f32 %v524_v11, %v512_v43 }
 0x258   :  { %v410_v44 = vsel %vm406_vm6, %v822_v48, %v833_v53  ;;  %v371_v47 = vmul.f32 %v359_v59, %v343_v54  ;;  %v372_v32 = vmul.f32 %v360_v63, %v344_v18  ;;  %v424_v59 = vsel %vm406_vm6, %v826_v51, %v822_v48 }
 0x259   :  { %v513_v24 = vadd.f32 %v505_v12, %v444_v58  ;;  %v514_v25 = vadd.f32 %v506_v13, %v445_v55  ;;  %v547_v26 = vadd.f32 %v539_v6, %v531_v14  ;;  %v548_v27 = vadd.f32 %v540_v5, %v532_v15 }
 0x25a   :  { %v438_v49 = vmul.f32 %v426_v0, %v410_v44  ;;  %v478_v53 = vsel %vm474_vm7, %v467_v33, %v866_v23  ;;  %v492_v48 = vsel %vm474_vm7, %v473_v56, %v467_v33  ;;  %v378_v0 = vadd.f32 %v370_v28, %v800_v7 }
 0x25b   :  { %v533_v30 = vadd.f32 %v524_v11, %v513_v24  ;;  %v534_v31 = vadd.f32 %v524_v11, %v514_v25  ;;  %555 = vst [vmem:[%s998_s8] sm:$0x1f] %v547_v26  ;;  %v379_v37 = vadd.f32 %v371_v47, %v802_v8  ;;  %v441_v38 = vmul.f32 %v429_v19, %v424_v59 }
 0x25c   :  { %556 = vst [vmem:[%s998_s8 + $0x8] sm:$0x1f] %v548_v27  ;;  %v380_v1 = vadd.f32 %v372_v32, %v804_v9  ;;  %v507_v33 = vmul.f32 %v495_v17, %v478_v53  ;;  %v510_v19 = vmul.f32 %v498_v46, %v492_v48  ;;  %v446_v42 = vadd.f32 %v438_v49, %v378_v0  ;;  %v546_v46 = vld [vmem:[%s997_s1 + $0x38] sm:$0x1] }
 0x25d   :  { %v549_v36 = vadd.f32 %v541_v40, %v533_v30  ;;  %v550_v63 = vadd.f32 %v542_v39, %v534_v31  ;;  %567 = vst.sshfl [vmem:[#allocation1] sm:$0xff pattern:$0x75316420] %v547_v26  ;;  %v471_v52 = vpop.permute.xlu1 %470  ;;  %v447_v9 = vadd.f32 %v439_v61, %v379_v37  ;;  %v449_v3 = vadd.f32 %v441_v38, %v381_v57 }
 0x25e   :  { %568 = vst.sshfl [vmem:[#allocation1 + $0x8] sm:$0xff pattern:$0x75316420] %v548_v27  ;;  %v479_v51 = vsel %vm474_vm7, %v866_v23, %v471_v52  ;;  %v480_v20 = vsel %vm474_vm7, %v471_v52, %v473_v56  ;;  %v448_v23 = vadd.f32 %v440_v35, %v380_v1  ;;  %v515_v17 = vadd.f32 %v507_v33, %v446_v42 }
 0x25f   :  { %557 = vst [vmem:[%s998_s8 + $0x10] sm:$0x1f] %v549_v36  ;;  %v508_v7 = vmul.f32 %v496_v16, %v479_v51  ;;  %v509_v8 = vmul.f32 %v497_v41, %v480_v20  ;;  %v518_v45 = vadd.f32 %v510_v19, %v449_v3  ;;  %v543_v16 = vld [vmem:[%s997_s1 + $0x20] sm:$0x1] }
 0x260   :  { %558 = vst [vmem:[%s998_s8 + $0x18] sm:$0x1f] %v550_v63 }
 0x261   :  { %569 = vst.sshfl [vmem:[#allocation1 + $0x10] sm:$0xff pattern:$0x75316420] %v549_v36  ;;  %v516_v4 = vadd.f32 %v508_v7, %v447_v9  ;;  %v517_v43 = vadd.f32 %v509_v8, %v448_v23 }
 0x262   :  { %570 = vst.sshfl [vmem:[#allocation1 + $0x18] sm:$0xff pattern:$0x75316420] %v550_v63 }
 0x265   :  { %v529_v41 = vpop.permute.xlu1 %528  ;;  %v576_v12 = vld [vmem:[#allocation1 + $0x1] ss:$2 sm:$0xff] }
 0x266   :  { %v535_v50 = vadd.f32 %v529_v41, %v515_v17  ;;  %v536_v55 = vadd.f32 %v529_v41, %v516_v4  ;;  %v537_v58 = vadd.f32 %v529_v41, %v517_v43  ;;  %v538_v62 = vadd.f32 %v529_v41, %v518_v45 }
 0x267   :  { %v642_v15 = vrot.slane %v576_v12, 9 }
 0x268   :  { %v551_v2 = vadd.f32 %v543_v16, %v535_v50  ;;  %v552_v6 = vadd.f32 %v544_v60, %v536_v55  ;;  %v553_v5 = vadd.f32 %v545_v10, %v537_v58  ;;  %v554_v11 = vadd.f32 %v546_v46, %v538_v62 }
 0x269   :  { %v578_v13 = vld [vmem:[#allocation1 + $0x11] ss:$2 sm:$0xff] }
 0x26a   :  { %571 = vst.sshfl [vmem:[#allocation1 + $0x20] sm:$0xff pattern:$0x75316420] %v551_v2  ;;  %v643_v21 = vrot.slane %v578_v13, 9 }
 0x26b   :  { %572 = vst.sshfl [vmem:[#allocation1 + $0x28] sm:$0xff pattern:$0x75316420] %v552_v6 }
 0x26c   :  { %573 = vst.sshfl [vmem:[#allocation1 + $0x30] sm:$0xff pattern:$0x75316420] %v553_v5 }
 0x26d   :  { %574 = vst.sshfl [vmem:[#allocation1 + $0x38] sm:$0xff pattern:$0x75316420] %v554_v11 }
 0x272   :  { %v580_v14 = vld [vmem:[#allocation1 + $0x20] ss:$2 sm:$0xff] }
 0x273   :  { %v588_v54 = vrot.slane %v580_v14, 5 }
 0x274   :  { %v582_v18 = vld [vmem:[#allocation1 + $0x30] ss:$2 sm:$0xff] }
 0x275   :  { %v589_v22 = vsel %vm585_vm10, %v642_v15, %v588_v54  ;;  %v592_v24 = vrot.slane %v582_v18, 5 }
 0x276   :  { %596 = vst [vmem:[%s999_s9] sm:$0xff] %v589_v22 }
 0x277   :  { %v593_v25 = vsel %vm585_vm10, %v643_v21, %v592_v24 }
 0x278   :  { %597 = vst [vmem:[%s999_s9 + $0x8] sm:$0xff] %v593_v25 }

</bundles_post_ra>
